<compile_context>
chip_gen: v7x
topology: tpu7x:2x2x1
jax: 0.10.0
libtpu: 0.0.40
codegen_flags: <defaults>
</compile_context>

<pallas_src>
import jax
import jax.numpy as jnp
from jax.experimental import pallas as pl
from jax.experimental.pallas import tpu as pltpu

ITEM_INPUT = 8813
N_OUT = 128
# Contraction dim of the first matmul, padded to the next multiple of 128.
K_PAD = ((ITEM_INPUT + 127) // 128) * 128   # 8832 (pad = 19)
K_TAIL = K_PAD - ITEM_INPUT                 # 19


def itemnet_kernel(x_ref, w1_ref, w2_ref, w3_ref, o_ref, xp_ref):
    """One batch tile:
       x_ref  : (TB, ITEM_INPUT) f32   (unpadded input tile)
       w1_ref : (K_PAD, N_OUT)   bf16  (zero-padded rows beyond ITEM_INPUT)
       w2_ref : (N_OUT, N_OUT)   bf16
       w3_ref : (N_OUT, N_OUT)   bf16
       o_ref  : (TB, N_OUT)      f32
       xp_ref : (TB, K_PAD)      bf16  VMEM scratch (padded/cast copy of x)
    """
    tb = xp_ref.shape[0]

    # Zero the 19 padded K lanes (must be finite so pad * 0 == 0, never NaN),
    # then fuse the f32->bf16 cast + pad of this x tile entirely inside VMEM.
    xp_ref[:, pl.ds(ITEM_INPUT, K_TAIL)] = jnp.zeros((tb, K_TAIL), jnp.bfloat16)
    xp_ref[:, pl.ds(0, ITEM_INPUT)] = x_ref[...].astype(jnp.bfloat16)

    # Big (TB, 8832) @ (8832, 128) matmul: bf16 operands, f32 MXU accumulation.
    x1 = jnp.maximum(
        jnp.dot(xp_ref[...], w1_ref[...], preferred_element_type=jnp.float32),
        0.0)                                                     # ReLU(linear_in)

    # Tiny epilogue: bf16 MXU operands, f32 accumulation, f32 VPU elementwise.
    l2 = jnp.maximum(
        jnp.dot(x1.astype(jnp.bfloat16), w2_ref[...],
                preferred_element_type=jnp.float32),
        0.0)                                                     # ReLU(linear_2)
    out = jnp.dot((l2 + x1).astype(jnp.bfloat16), w3_ref[...],
                  preferred_element_type=jnp.float32)            # linear_out
    o_ref[...] = out.astype(o_ref.dtype)


def prepare_item_weights(w1, w2, w3):
    """One-time weight prep, hoisted out of the forward pass:
    pad W1's contraction dim to K_PAD and cast all weights to bf16."""
    w1_p = jnp.pad(w1, ((0, K_TAIL), (0, 0))).astype(jnp.bfloat16)
    return w1_p, w2.astype(jnp.bfloat16), w3.astype(jnp.bfloat16)


def _pick_batch_tile(batch):
    """Largest batch tile <= 512 that evenly divides `batch` (keeps blocks
    sublane-aligned and the xp scratch small). Small batches run as one tile."""
    if batch <= 512:
        return batch
    for tb in (512, 256, 128, 64, 32, 16, 8):
        if batch % tb == 0:
            return tb
    return batch  # TODO(synk): pad odd, large batches instead of one big tile.


@jax.jit
def itemnet_forward(x, w1_p, w2_p, w3_p):
    """x: (B, ITEM_INPUT) f32.  w1_p: (K_PAD, 128) bf16, w2_p/w3_p: (128, 128)
    bf16 from prepare_item_weights.  Returns (B, 128) f32."""
    B = x.shape[0]
    TB = _pick_batch_tile(B)
    n_tiles = B // TB

    flops = 2 * B * ITEM_INPUT * N_OUT + 2 * (2 * B * N_OUT * N_OUT)
    bytes_accessed = (x.size * 4 + w1_p.size * 2 + w2_p.size * 2 +
                      w3_p.size * 2 + B * N_OUT * 4)

    return pl.pallas_call(
        itemnet_kernel,
        out_shape=jax.ShapeDtypeStruct((B, N_OUT), jnp.float32),
        grid=(n_tiles,),  # batch tiles; weights stay VMEM-resident across them
        in_specs=[
            pl.BlockSpec((TB, ITEM_INPUT), lambda b: (b, 0)),   # x   (f32, unpadded)
            pl.BlockSpec((K_PAD, N_OUT), lambda b: (0, 0)),     # W1  (bf16, fetched once)
            pl.BlockSpec((N_OUT, N_OUT), lambda b: (0, 0)),     # W2  (bf16, fetched once)
            pl.BlockSpec((N_OUT, N_OUT), lambda b: (0, 0)),     # W3  (bf16, fetched once)
        ],
        out_specs=pl.BlockSpec((TB, N_OUT), lambda b: (b, 0)),
        scratch_shapes=[pltpu.VMEM((TB, K_PAD), jnp.bfloat16)],  # padded bf16 x tile
        compiler_params=pltpu.CompilerParams(
            dimension_semantics=("parallel",)),
        cost_estimate=pl.CostEstimate(
            flops=flops, transcendentals=0, bytes_accessed=bytes_accessed),
    )(x, w1_p, w2_p, w3_p)


def reference_forward_f32(x, w1, w2, w3):
    """Exact module semantics (all f32)."""
    x1 = jnp.maximum(x @ w1, 0.0)
    l2 = jnp.maximum(x1 @ w2, 0.0)
    return (l2 + x1) @ w3


def reference_forward_bf16(x, w1, w2, w3):
    """Reference mirroring the kernel's numerics (bf16 operands, f32 accum)."""
    bf = jnp.bfloat16
    x1 = jnp.maximum(
        jnp.dot(x.astype(bf), w1.astype(bf),
                preferred_element_type=jnp.float32), 0.0)
    l2 = jnp.maximum(
        jnp.dot(x1.astype(bf), w2.astype(bf),
                preferred_element_type=jnp.float32), 0.0)
    return jnp.dot((l2 + x1).astype(bf), w3.astype(bf),
                   preferred_element_type=jnp.float32)


if __name__ == "__main__":
    key = jax.random.PRNGKey(0)
    kx, k1, k2, k3 = jax.random.split(key, 4)

    B = 8  # small batch
    x = jax.random.normal(kx, (B, ITEM_INPUT), dtype=jnp.float32)

    # Deterministic synthetic weights (Kaiming-uniform-ish scale), stored (in, out).
    def init_w(k, fan_in, fan_out):
        bound = 1.0 / jnp.sqrt(fan_in)
        return jax.random.uniform(k, (fan_in, fan_out), jnp.float32, -bound, bound)

    w1 = init_w(k1, ITEM_INPUT, N_OUT)
    w2 = init_w(k2, N_OUT, N_OUT)
    w3 = init_w(k3, N_OUT, N_OUT)

    # One-time weight prep (pad + bf16 cast hoisted out of the forward).
    w1_p, w2_p, w3_p = prepare_item_weights(w1, w2, w3)

    out = itemnet_forward(x, w1_p, w2_p, w3_p)
    jax.block_until_ready(out)
    assert out.shape == (B, N_OUT)

    # Tight check against a reference with matching bf16/f32-accum numerics ...
    ref_bf16 = reference_forward_bf16(x, w1, w2, w3)
    assert jnp.allclose(out, ref_bf16, atol=2e-2, rtol=2e-2), \
        float(jnp.max(jnp.abs(out - ref_bf16)))
    # ... and the exact f32 module semantics within bf16-rounding tolerance.
    ref_f32 = reference_forward_f32(x, w1, w2, w3)
    assert jnp.allclose(out, ref_f32, atol=5e-2, rtol=5e-2), \
        float(jnp.max(jnp.abs(out - ref_f32)))

    print("KERNEL_OK")
</pallas_src>

<mosaic_0001>
module attributes {stable_mosaic.version = 11 : i64} {
  func.func @itemnet_kernel(%arg0: i32, %arg1: memref<8x8813xf32, #tpu.memory_space<vmem>>, %arg2: memref<8832x128xbf16, #tpu.memory_space<vmem>>, %arg3: memref<128x128xbf16, #tpu.memory_space<vmem>>, %arg4: memref<128x128xbf16, #tpu.memory_space<vmem>>, %arg5: memref<8x128xf32, #tpu.memory_space<vmem>>, %arg6: memref<8x8832xbf16, #tpu.memory_space<vmem>>) attributes {dimension_semantics = [#tpu.dimension_semantics<parallel>], iteration_bounds = array<i64: 1>, scalar_prefetch = 0 : i64, scratch_operands = 1 : i64, tpu.core_type = #tpu.core_type<tc>, window_params = [{transform_indices = @transform_0, window_bounds = array<i64: 8, 8813>}, {pipeline_mode = #tpu.pipeline_mode<synchronous>, transform_indices = @transform_1, window_bounds = array<i64: 8832, 128>}, {pipeline_mode = #tpu.pipeline_mode<synchronous>, transform_indices = @transform_2, window_bounds = array<i64: 128, 128>}, {pipeline_mode = #tpu.pipeline_mode<synchronous>, transform_indices = @transform_3, window_bounds = array<i64: 128, 128>}, {transform_indices = @transform_4, window_bounds = array<i64: 8, 128>}]} {
    %cst = arith.constant 0.000000e+00 : bf16
    %0 = vector.broadcast %cst : bf16 to vector<8x19xbf16>
    %c0 = arith.constant 0 : index
    %c8813 = arith.constant 8813 : index
    %1 = vector.load %arg6[%c0, %c8813] : memref<8x8832xbf16, #tpu.memory_space<vmem>>, vector<8x19xbf16>
    tpu.vector_store %arg6[%c0, %c8813], %0 {strides = array<i32>} : memref<8x8832xbf16, #tpu.memory_space<vmem>>, vector<8x19xbf16>,
    %c0_0 = arith.constant 0 : index
    %c0_1 = arith.constant 0 : index
    %2 = vector.load %arg1[%c0_0, %c0_1] : memref<8x8813xf32, #tpu.memory_space<vmem>>, vector<8x8813xf32>
    %3 = arith.truncf %2 : vector<8x8813xf32> to vector<8x8813xbf16>
    %c0_2 = arith.constant 0 : index
    %c0_3 = arith.constant 0 : index
    %4 = vector.load %arg6[%c0_2, %c0_3] : memref<8x8832xbf16, #tpu.memory_space<vmem>>, vector<8x8813xbf16>
    tpu.vector_store %arg6[%c0_2, %c0_3], %3 {strides = array<i32>} : memref<8x8832xbf16, #tpu.memory_space<vmem>>, vector<8x8813xbf16>,
    %c0_4 = arith.constant 0 : index
    %c0_5 = arith.constant 0 : index
    %5 = vector.load %arg6[%c0_4, %c0_5] : memref<8x8832xbf16, #tpu.memory_space<vmem>>, vector<8x8832xbf16>
    %c0_6 = arith.constant 0 : index
    %c0_7 = arith.constant 0 : index
    %6 = vector.load %arg2[%c0_6, %c0_7] : memref<8832x128xbf16, #tpu.memory_space<vmem>>, vector<8832x128xbf16>
    %cst_8 = arith.constant dense<0.000000e+00> : vector<8x128xf32>
    %7 = tpu.matmul %5, %6, %cst_8 {dimension_numbers = #tpu.dot_dimension_numbers<[1], [0], [0], [1], [0, 0, 1, 1], [], []>} : vector<8x8832xbf16>, vector<8832x128xbf16>, vector<8x128xf32> -> vector<8x128xf32>
    %cst_9 = arith.constant 0.000000e+00 : f32
    %8 = vector.broadcast %cst_9 : f32 to vector<8x128xf32>
    %9 = arith.maximumf %7, %8 : vector<8x128xf32>
    %10 = arith.truncf %9 : vector<8x128xf32> to vector<8x128xbf16>
    %c0_10 = arith.constant 0 : index
    %c0_11 = arith.constant 0 : index
    %11 = vector.load %arg3[%c0_10, %c0_11] : memref<128x128xbf16, #tpu.memory_space<vmem>>, vector<128x128xbf16>
    %cst_12 = arith.constant dense<0.000000e+00> : vector<8x128xf32>
    %12 = tpu.matmul %10, %11, %cst_12 {dimension_numbers = #tpu.dot_dimension_numbers<[1], [0], [0], [1], [0, 0, 1, 1], [], []>} : vector<8x128xbf16>, vector<128x128xbf16>, vector<8x128xf32> -> vector<8x128xf32>
    %cst_13 = arith.constant 0.000000e+00 : f32
    %13 = vector.broadcast %cst_13 : f32 to vector<8x128xf32>
    %14 = arith.maximumf %12, %13 : vector<8x128xf32>
    %15 = arith.addf %14, %9 : vector<8x128xf32>
    %16 = arith.truncf %15 : vector<8x128xf32> to vector<8x128xbf16>
    %c0_14 = arith.constant 0 : index
    %c0_15 = arith.constant 0 : index
    %17 = vector.load %arg4[%c0_14, %c0_15] : memref<128x128xbf16, #tpu.memory_space<vmem>>, vector<128x128xbf16>
    %cst_16 = arith.constant dense<0.000000e+00> : vector<8x128xf32>
    %18 = tpu.matmul %16, %17, %cst_16 {dimension_numbers = #tpu.dot_dimension_numbers<[1], [0], [0], [1], [0, 0, 1, 1], [], []>} : vector<8x128xbf16>, vector<128x128xbf16>, vector<8x128xf32> -> vector<8x128xf32>
    %c0_17 = arith.constant 0 : index
    %c0_18 = arith.constant 0 : index
    %19 = vector.load %arg5[%c0_17, %c0_18] : memref<8x128xf32, #tpu.memory_space<vmem>>, vector<8x128xf32>
    tpu.vector_store %arg5[%c0_17, %c0_18], %18 {strides = array<i32>} : memref<8x128xf32, #tpu.memory_space<vmem>>, vector<8x128xf32>,
    return
  }
  func.func @transform_0(%arg0: i32) -> (i32, i32) {
    %c0_i32 = arith.constant 0 : i32
    %c0_i32_0 = arith.constant 0 : i32
    return %arg0, %c0_i32 : i32, i32
  }
  func.func @transform_1(%arg0: i32) -> (i32, i32) {
    %c0_i32 = arith.constant 0 : i32
    %c0_i32_0 = arith.constant 0 : i32
    %c0_i32_1 = arith.constant 0 : i32
    return %c0_i32, %c0_i32_0 : i32, i32
  }
  func.func @transform_2(%arg0: i32) -> (i32, i32) {
    %c0_i32 = arith.constant 0 : i32
    %c0_i32_0 = arith.constant 0 : i32
    %c0_i32_1 = arith.constant 0 : i32
    return %c0_i32, %c0_i32_0 : i32, i32
  }
  func.func @transform_3(%arg0: i32) -> (i32, i32) {
    %c0_i32 = arith.constant 0 : i32
    %c0_i32_0 = arith.constant 0 : i32
    %c0_i32_1 = arith.constant 0 : i32
    return %c0_i32, %c0_i32_0 : i32, i32
  }
  func.func @transform_4(%arg0: i32) -> (i32, i32) {
    %c0_i32 = arith.constant 0 : i32
    %c0_i32_0 = arith.constant 0 : i32
    return %arg0, %c0_i32 : i32, i32
  }
}

</mosaic_0001>

<bundles_post_ra>
// kernel: itemnet_forward.1
= control target key start
LH: loop header
LB: loop body
LE: loop exit
PB: predicated region body
PF: predicated region fallthrough
CT: control target
= control target key end

     0   :  { %9 = vsyncpa [#allocation4], 0  ;;  %s9251_s0 = inlined_call_operand.hbm [shape: f32[8,8813], index: 0, kind: input, shape index: {}]   ;;  %s9252_s1 = inlined_call_operand.hbm [shape: bf16[8832,128], index: 1, kind: input, shape index: {}]   ;;  %s9253_s2 = inlined_call_operand.hbm [shape: bf16[128,128], index: 2, kind: input, shape index: {}]   ;;  %s9254_s3 = inlined_call_operand.hbm [shape: bf16[128,128], index: 3, kind: input, shape index: {}]   ;;  %s9255_s4 = inlined_call_operand.hbm [shape: f32[8,128], index: 4, kind: output, shape index: {}]  }
   0x1   :  { %10 = vsyncpa [#allocation7], 0 }
   0x2   :  { %11 = vsyncpa [#allocation10], 0 }
   0x3   :  { %12 = vsyncpa [#allocation5], 0  ;;  %s9087_s15 = smov [#allocation6]   ;;  %s8969_s19 = scalar_lea.hbm %s9252_s1, 70656 }
   0x4   :  { %s28_s16 = sshll.u32 %s9087_s15, 4  ;;  %p8970_p0 = scmp.ne.s32.totalorder %s9252_s1, %s8969_s19  ;;  %s29_s16 = int_to_ptr.vmem [resolvable:$true] %s28_s16 }
   0x5   :  { %p8973_p1 = scmp.lt.u32.totalorder %s8969_s19, %s9252_s1 }
   0x7   :  { %p8975_p2 = pnand %p8973_p1, %p8970_p0 }
   0x9   :  { %8978 = shalt.err (!%p8975_p2)
}
   0xa   :  { %s8979_s24 = scalar_lea.vmem %s29_s16, 70656  ;;  %p8984_p4 = scmp.lt.s32.totalorder %s29_s16, %s29_s16 }
   0xb   :  { %p8980_p3 = scmp.ne.s32.totalorder %s29_s16, %s8979_s24  ;;  %p8985_p5 = scmp.lt.s32.totalorder %s8979_s24, %s8979_s24 }
   0xd   :  { %p8986_p6 = por %p8985_p5, %p8984_p4 }
   0xf   :  { %p8987_p7 = pnand %p8986_p6, %p8980_p3 }
  0x11   :  { %8990 = shalt.err (!%p8987_p7)
}
  0x12   :  { %s9088_s25 = smov 64   ;;  %s9089_s26 = smov 4  }
  0x13   :  { %34 = dma.hbm_to_vmem [thread:$0]  %s9252_s1, 70656, %s29_s16, [#allocation7], %s9088_s25, %s9088_s25, %s9089_s26  }
  0x14   :  { %s9090_s29 = smov [#allocation3]   ;;  %s9091_s5 = smov [#allocation8]  }
  0x15   :  { %s19_s30 = sshll.u32 %s9090_s29, 4  ;;  %s40_s6 = sshll.u32 %s9091_s5, 4  ;;  %s20_s30 = int_to_ptr.vmem [resolvable:$true] %s19_s30  ;;  %s41_s6 = int_to_ptr.vmem [resolvable:$true] %s40_s6 }
  0x16   :  { %s8991_s9 = scalar_lea.hbm %s9251_s0, 8832 }
  0x17   :  { %p8992_p8 = scmp.ne.s32.totalorder %s9251_s0, %s8991_s9  ;;  %p8995_p9 = scmp.lt.u32.totalorder %s8991_s9, %s9251_s0 }
  0x19   :  { %p8997_p10 = pnand %p8995_p9, %p8992_p8 }
  0x1b   :  { %9000 = shalt.err (!%p8997_p10)
}
  0x1c   :  { %s9001_s1 = scalar_lea.vmem %s20_s30, 8832  ;;  %p9006_p12 = scmp.lt.s32.totalorder %s20_s30, %s20_s30 }
  0x1d   :  { %p9002_p11 = scmp.ne.s32.totalorder %s20_s30, %s9001_s1  ;;  %p9007_p13 = scmp.lt.s32.totalorder %s9001_s1, %s9001_s1 }
  0x1f   :  { %p9008_p0 = por %p9007_p13, %p9006_p12 }
  0x21   :  { %p9009_p1 = pnand %p9008_p0, %p9002_p11 }
  0x23   :  { %9012 = shalt.err (!%p9009_p1)
}
  0x24   :  { %22 = dma.hbm_to_vmem [thread:$0]  %s9251_s0, 8832, %s20_s30, [#allocation4]  }
  0x25   :  { %s9013_s18 = scalar_lea.hbm %s9253_s2, 1024 }
  0x26   :  { %p9014_p2 = scmp.ne.s32.totalorder %s9253_s2, %s9013_s18  ;;  %p9017_p3 = scmp.lt.u32.totalorder %s9013_s18, %s9253_s2 }
  0x28   :  { %p9019_p4 = pnand %p9017_p3, %p9014_p2 }
  0x2a   :  { %9022 = shalt.err (!%p9019_p4)
}
  0x2b   :  { %s9023_s23 = scalar_lea.vmem %s41_s6, 1024  ;;  %p9028_p6 = scmp.lt.s32.totalorder %s41_s6, %s41_s6 }
  0x2c   :  { %p9024_p5 = scmp.ne.s32.totalorder %s41_s6, %s9023_s23  ;;  %p9029_p7 = scmp.lt.s32.totalorder %s9023_s23, %s9023_s23 }
  0x2e   :  { %p9030_p8 = por %p9029_p7, %p9028_p6 }
  0x30   :  { %p9031_p9 = pnand %p9030_p8, %p9024_p5 }
  0x32   :  { %9034 = shalt.err (!%p9031_p9)
}
  0x33   :  { %46 = dma.hbm_to_vmem [thread:$0]  %s9253_s2, 1024, %s41_s6, [#allocation7], %s9088_s25, %s9088_s25, %s9089_s26  }
  0x34   :  { %s9092_s27 = smov [#allocation9]   ;;  %s9035_s5 = scalar_lea.hbm %s9254_s3, 1024 }
  0x35   :  { %s52_s28 = sshll.u32 %s9092_s27, 4  ;;  %p9036_p10 = scmp.ne.s32.totalorder %s9254_s3, %s9035_s5  ;;  %s53_s28 = int_to_ptr.vmem [resolvable:$true] %s52_s28 }
  0x36   :  { %p9039_p11 = scmp.lt.u32.totalorder %s9035_s5, %s9254_s3 }
  0x38   :  { %p9041_p12 = pnand %p9039_p11, %p9036_p10 }
  0x3a   :  { %9044 = shalt.err (!%p9041_p12)
}
  0x3b   :  { %s9045_s11 = scalar_lea.vmem %s53_s28, 1024  ;;  %p9050_p0 = scmp.lt.s32.totalorder %s53_s28, %s53_s28 }
  0x3c   :  { %p9046_p13 = scmp.ne.s32.totalorder %s53_s28, %s9045_s11  ;;  %p9051_p1 = scmp.lt.s32.totalorder %s9045_s11, %s9045_s11 }
  0x3e   :  { %p9052_p2 = por %p9051_p1, %p9050_p0 }
  0x40   :  { %p9053_p3 = pnand %p9052_p2, %p9046_p13 }
  0x42   :  { %9056 = shalt.err (!%p9053_p3)
}
  0x43   :  { %58 = dma.hbm_to_vmem [thread:$0]  %s9254_s3, 1024, %s53_s28, [#allocation10], %s9088_s25, %s9088_s25, %s9089_s26  }
  0x44   :  { %9079 = dma.done.wait [#allocation4], 8832  }
  0x45   :  { %9080 = vsyncadd [#allocation4], 4294958464 }
  0x46   :  { %9081 = dma.done.wait [#allocation7], 71680  }
  0x47   :  { %9082 = vsyncadd [#allocation7], 4294895616 }
  0x48   :  { %9083 = dma.done.wait [#allocation10], 1024  }
  0x49   :  { %9084 = vsyncadd [#allocation10], 4294966272  ;;  %v8332_v0 = vld [vmem:[#allocation6 + $0x40] sm:$0xff]   ;;  %v8336_v4 = vld [vmem:[#allocation6 + $0x48] sm:$0xff]   ;;  %vm72_vm0 = vcmask 1044328   ;;  %vm9095_vm1 = vmmov 0  }
  0x4a   :  { %v8333_v1 = vld [vmem:[#allocation6 + $0xc0] sm:$0xff]   ;;  %7487 = vmatprep.subr.bf16.mxu0 %v8332_v0  ;;  %v8337_v5 = vld [vmem:[#allocation6 + $0xc8] sm:$0xff]   ;;  %v8340_v8 = vld [vmem:[#allocation6 + $0x50] sm:$0xff]   ;;  %vm454_vm2 = vcmask 887808   ;;  %s9096_s3 = smov [#allocation11]  }
  0x4b   :  { %v8334_v2 = vld [vmem:[#allocation6] sm:$0xff]   ;;  %7509 = vmatprep.subr.bf16.mxu1 %v8333_v1  ;;  %v8338_v6 = vld [vmem:[#allocation6 + $0x8] sm:$0xff]   ;;  %v8341_v9 = vld [vmem:[#allocation6 + $0xd0] sm:$0xff]   ;;  %s6769_s25 = sshll.u32 %s9096_s3, 4  ;;  %s6770_s25 = int_to_ptr.vmem [resolvable:$true] %s6769_s25 }
  0x4c   :  { %v8335_v3 = vld [vmem:[#allocation6 + $0x80] sm:$0xff]   ;;  %7488 = vmatpush3.bf16.msra.mxu0 %v8334_v2  ;;  %v8339_v7 = vld [vmem:[#allocation6 + $0x88] sm:$0xff]   ;;  %v8342_v10 = vld [vmem:[#allocation6 + $0x10] sm:$0xff]   ;;  %s9057_s26 = scalar_lea.vmem %s6770_s25, 128  ;;  %p9062_p5 = scmp.lt.s32.totalorder %s6770_s25, %s6770_s25 }
  0x4d   :  { %7510 = vmatpush3.bf16.msra.mxu1 %v8335_v3  ;;  %7489 = vmatprep.subr.bf16.mxu0 %v8336_v4  ;;  %v8343_v11 = vld [vmem:[#allocation6 + $0x90] sm:$0xff]   ;;  %v8344_v12 = vld [vmem:[#allocation6 + $0x58] sm:$0xff]   ;;  %v8348_v16 = vld [vmem:[#allocation6 + $0x60] sm:$0xff]   ;;  %p9058_p4 = scmp.ne.s32.totalorder %s6770_s25, %s9057_s26  ;;  %p9063_p6 = scmp.lt.s32.totalorder %s9057_s26, %s9057_s26 }
  0x4e   :  { %7511 = vmatprep.subr.bf16.mxu1 %v8337_v5  ;;  %v8345_v13 = vld [vmem:[#allocation6 + $0xd8] sm:$0xff]   ;;  %v8349_v17 = vld [vmem:[#allocation6 + $0xe0] sm:$0xff]   ;;  %v8352_v20 = vld [vmem:[#allocation6 + $0x68] sm:$0xff]  }
  0x4f   :  { %v8346_v14 = vld [vmem:[#allocation6 + $0x18] sm:$0xff]   ;;  %v8350_v18 = vld [vmem:[#allocation6 + $0x20] sm:$0xff]   ;;  %v8353_v21 = vld [vmem:[#allocation6 + $0xe8] sm:$0xff]   ;;  %p9064_p7 = por %p9063_p6, %p9062_p5 }
  0x50   :  { %7490 = vmatpush3.bf16.msra.mxu0 %v8338_v6  ;;  %v8347_v15 = vld [vmem:[#allocation6 + $0x98] sm:$0xff]   ;;  %v8351_v19 = vld [vmem:[#allocation6 + $0xa0] sm:$0xff]   ;;  %v8354_v22 = vld [vmem:[#allocation6 + $0x28] sm:$0xff]  }
  0x51   :  { %7512 = vmatpush3.bf16.msra.mxu1 %v8339_v7  ;;  %7491 = vmatprep.subr.bf16.mxu0 %v8340_v8  ;;  %v8355_v23 = vld [vmem:[#allocation6 + $0xa8] sm:$0xff]   ;;  %v8356_v24 = vld [vmem:[#allocation6 + $0x70] sm:$0xff]   ;;  %v8360_v28 = vld [vmem:[#allocation6 + $0x78] sm:$0xff]   ;;  %p9065_p8 = pnand %p9064_p7, %p9058_p4 }
  0x52   :  { %7513 = vmatprep.subr.bf16.mxu1 %v8341_v9  ;;  %v8357_v25 = vld [vmem:[#allocation6 + $0xf0] sm:$0xff]   ;;  %v8361_v29 = vld [vmem:[#allocation6 + $0xf8] sm:$0xff]   ;;  %v75_v33 = vld [vmem:[#allocation3 + $0x8] sm:$0xff] }
  0x53   :  { %v8358_v26 = vld [vmem:[#allocation6 + $0x30] sm:$0xff]   ;;  %v8362_v30 = vld [vmem:[#allocation6 + $0x38] sm:$0xff]   ;;  %v76_v34 = vld [vmem:[#allocation3 + $0x10] sm:$0xff]  ;;  %v8902_v38 = vpack.c.bf16 %v75_v33, %v75_v33 }
  0x54   :  { %7492 = vmatpush3.bf16.msra.mxu0 %v8342_v10  ;;  %v8359_v27 = vld [vmem:[#allocation6 + $0xb0] sm:$0xff]   ;;  %v8363_v31 = vld [vmem:[#allocation6 + $0xb8] sm:$0xff]   ;;  %v8364_v36 = vld [vmem:[#allocation6 + $0x140] sm:$0xff]   ;;  %v8903_v40 = vpack.c.bf16 %v76_v34, %v76_v34 }
  0x55   :  { %7514 = vmatpush3.bf16.msra.mxu1 %v8343_v11  ;;  %7493 = vmatprep.subr.bf16.mxu0 %v8344_v12  ;;  %v74_v32 = vld [vmem:[#allocation3] sm:$0xff]  ;;  %v77_v35 = vld [vmem:[#allocation3 + $0x18] sm:$0xff]  ;;  %v8365_v39 = vld [vmem:[#allocation6 + $0x100] sm:$0xff]  }
  0x56   :  { %7515 = vmatprep.subr.bf16.mxu1 %v8345_v13  ;;  %v8901_v37 = vpack.c.bf16 %v74_v32, %v74_v32  ;;  %v8904_v41 = vpack.c.bf16 %v77_v35, %v77_v35  ;;  %v8366_v42 = vld [vmem:[#allocation6 + $0x1c0] sm:$0xff]   ;;  %5181 = vmatprep.mubr.bf16.mxu0 %v8902_v38  ;;  %v8368_v44 = vld [vmem:[#allocation6 + $0x148] sm:$0xff]   ;;  %v8372_v48 = vld [vmem:[#allocation6 + $0x150] sm:$0xff]  }
  0x57   :  { %v8367_v43 = vld [vmem:[#allocation6 + $0x180] sm:$0xff]   ;;  %v8369_v45 = vld [vmem:[#allocation6 + $0x108] sm:$0xff]   ;;  %v8373_v49 = vld [vmem:[#allocation6 + $0x110] sm:$0xff]  }
  0x58   :  { %7494 = vmatpush3.bf16.msra.mxu0 %v8346_v14  ;;  %5221 = vmatprep.mubr.bf16.mxu1 %v8904_v41  ;;  %v8370_v46 = vld [vmem:[#allocation6 + $0x1c8] sm:$0xff]   ;;  %v8374_v50 = vld [vmem:[#allocation6 + $0x1d0] sm:$0xff]   ;;  %v8376_v52 = vld [vmem:[#allocation6 + $0x158] sm:$0xff]  }
  0x59   :  { %7516 = vmatpush3.bf16.msra.mxu1 %v8347_v15  ;;  %7495 = vmatprep.subr.bf16.mxu0 %v8348_v16  ;;  %v8371_v47 = vld [vmem:[#allocation6 + $0x188] sm:$0xff]   ;;  %v8375_v51 = vld [vmem:[#allocation6 + $0x190] sm:$0xff]   ;;  %v8377_v53 = vld [vmem:[#allocation6 + $0x118] sm:$0xff]  }
  0x5a   :  { %7517 = vmatprep.subr.bf16.mxu1 %v8349_v17  ;;  %v8378_v54 = vld [vmem:[#allocation6 + $0x1d8] sm:$0xff]   ;;  %v8380_v56 = vld [vmem:[#allocation6 + $0x160] sm:$0xff]   ;;  %v8384_v60 = vld [vmem:[#allocation6 + $0x168] sm:$0xff]  }
  0x5b   :  { %v8379_v55 = vld [vmem:[#allocation6 + $0x198] sm:$0xff]   ;;  %v8381_v57 = vld [vmem:[#allocation6 + $0x120] sm:$0xff]   ;;  %v8385_v61 = vld [vmem:[#allocation6 + $0x128] sm:$0xff]  }
  0x5c   :  { %7496 = vmatpush3.bf16.msra.mxu0 %v8350_v18  ;;  %v8382_v58 = vld [vmem:[#allocation6 + $0x1e0] sm:$0xff]   ;;  %v8386_v62 = vld [vmem:[#allocation6 + $0x1e8] sm:$0xff]   ;;  %v8388_v0 = vld [vmem:[#allocation6 + $0x170] sm:$0xff]  }
  0x5d   :  { %7518 = vmatpush3.bf16.msra.mxu1 %v8351_v19  ;;  %7497 = vmatprep.subr.bf16.mxu0 %v8352_v20  ;;  %v8383_v59 = vld [vmem:[#allocation6 + $0x1a0] sm:$0xff]   ;;  %v8387_v63 = vld [vmem:[#allocation6 + $0x1a8] sm:$0xff]   ;;  %v8389_v1 = vld [vmem:[#allocation6 + $0x130] sm:$0xff]  }
  0x5e   :  { %7519 = vmatprep.subr.bf16.mxu1 %v8353_v21  ;;  %v8390_v2 = vld [vmem:[#allocation6 + $0x1f0] sm:$0xff]   ;;  %v8392_v4 = vld [vmem:[#allocation6 + $0x178] sm:$0xff]   ;;  %v79_v8 = vld [vmem:[#allocation3 + $0x28] sm:$0xff] }
  0x5f   :  { %v8391_v3 = vld [vmem:[#allocation6 + $0x1b0] sm:$0xff]   ;;  %v8393_v5 = vld [vmem:[#allocation6 + $0x138] sm:$0xff]   ;;  %v8396_v10 = vld [vmem:[#allocation6 + $0x240] sm:$0xff]   ;;  %v8906_v12 = vpack.c.bf16 %v79_v8, %v79_v8 }
  0x60   :  { %7498 = vmatpush3.bf16.msra.mxu0 %v8354_v22  ;;  %v8394_v6 = vld [vmem:[#allocation6 + $0x1f8] sm:$0xff]   ;;  %v80_v13 = vld [vmem:[#allocation3 + $0x30] sm:$0xff]  ;;  %v81_v14 = vld [vmem:[#allocation3 + $0x38] sm:$0xff] }
  0x61   :  { %7520 = vmatpush3.bf16.msra.mxu1 %v8355_v23  ;;  %7499 = vmatprep.subr.bf16.mxu0 %v8356_v24  ;;  %v78_v7 = vld [vmem:[#allocation3 + $0x20] sm:$0xff]  ;;  %v8397_v15 = vld [vmem:[#allocation6 + $0x200] sm:$0xff]   ;;  %v8907_v17 = vpack.c.bf16 %v80_v13, %v80_v13  ;;  %v8908_v18 = vpack.c.bf16 %v81_v14, %v81_v14  ;;  %v8400_v20 = vld [vmem:[#allocation6 + $0x248] sm:$0xff]  }
  0x62   :  { %7521 = vmatprep.subr.bf16.mxu1 %v8357_v25  ;;  %v8395_v9 = vld [vmem:[#allocation6 + $0x1b8] sm:$0xff]   ;;  %v8905_v11 = vpack.c.bf16 %v78_v7, %v78_v7  ;;  %v8398_v16 = vld [vmem:[#allocation6 + $0x2c0] sm:$0xff]   ;;  %v8401_v21 = vld [vmem:[#allocation6 + $0x208] sm:$0xff]  }
  0x63   :  { %v8399_v19 = vld [vmem:[#allocation6 + $0x280] sm:$0xff]   ;;  %v8402_v22 = vld [vmem:[#allocation6 + $0x2c8] sm:$0xff]   ;;  %v8404_v24 = vld [vmem:[#allocation6 + $0x250] sm:$0xff]  }
  0x64   :  { %7500 = vmatpush3.bf16.msra.mxu0 %v8358_v26  ;;  %v8403_v23 = vld [vmem:[#allocation6 + $0x288] sm:$0xff]   ;;  %v8405_v25 = vld [vmem:[#allocation6 + $0x210] sm:$0xff]   ;;  %v8412_v32 = vld [vmem:[#allocation6 + $0x260] sm:$0xff]  }
  0x65   :  { %7522 = vmatpush3.bf16.msra.mxu1 %v8359_v27  ;;  %7501 = vmatprep.subr.bf16.mxu0 %v8360_v28  ;;  %v8406_v26 = vld [vmem:[#allocation6 + $0x2d0] sm:$0xff]   ;;  %v8408_v28 = vld [vmem:[#allocation6 + $0x258] sm:$0xff]   ;;  %v8413_v33 = vld [vmem:[#allocation6 + $0x220] sm:$0xff]  }
  0x66   :  { %7523 = vmatprep.subr.bf16.mxu1 %v8361_v29  ;;  %v8407_v27 = vld [vmem:[#allocation6 + $0x290] sm:$0xff]   ;;  %v8409_v29 = vld [vmem:[#allocation6 + $0x218] sm:$0xff]   ;;  %v8414_v34 = vld [vmem:[#allocation6 + $0x2e0] sm:$0xff]  }
  0x67   :  { %v8415_v35 = vld [vmem:[#allocation6 + $0x2a0] sm:$0xff]   ;;  %v8418_v38 = vld [vmem:[#allocation6 + $0x2e8] sm:$0xff]   ;;  %v8421_v41 = vld [vmem:[#allocation6 + $0x230] sm:$0xff]  }
  0x68   :  { %7502 = vmatpush3.bf16.msra.mxu0 %v8362_v30  ;;  %v8410_v30 = vld [vmem:[#allocation6 + $0x2d8] sm:$0xff]   ;;  %v8444_v8 = vld [vmem:[#allocation6 + $0x360] sm:$0xff]   ;;  %v8449_v13 = vld [vmem:[#allocation6 + $0x328] sm:$0xff]  }
  0x69   :  { %7524 = vmatpush3.bf16.msra.mxu1 %v8363_v31  ;;  %7531 = vmatprep.subr.bf16.mxu0 %v8364_v36  ;;  %v8411_v31 = vld [vmem:[#allocation6 + $0x298] sm:$0xff]   ;;  %v8416_v36 = vld [vmem:[#allocation6 + $0x268] sm:$0xff]  }
  0x6a   :  { %7553 = vmatprep.subr.bf16.mxu1 %v8366_v42  ;;  %v8422_v42 = vld [vmem:[#allocation6 + $0x2f0] sm:$0xff]   ;;  %v8443_v7 = vld [vmem:[#allocation6 + $0x398] sm:$0xff]   ;;  %v8450_v14 = vld [vmem:[#allocation6 + $0x3e8] sm:$0xff]  }
  0x6b   :  { %5182 = vmatmul.mubr.bf16.vlgmr.msra.gmra.mrb[0].mxu0 %v8901_v37  ;;  %v8417_v37 = vld [vmem:[#allocation6 + $0x228] sm:$0xff]  }
  0x6c   :  { %5222 = vmatmul.mubr.bf16.vlgmr.msra.gmra.mrb[0].mxu1 %v8903_v40  ;;  %7532 = vmatpush3.bf16.msra.mxu0 %v8365_v39  ;;  %v8419_v39 = vld [vmem:[#allocation6 + $0x2a8] sm:$0xff]   ;;  %v8420_v40 = vld [vmem:[#allocation6 + $0x270] sm:$0xff]  }
  0x6d   :  { %7533 = vmatprep.subr.bf16.mxu0 %v8368_v44  ;;  %7554 = vmatpush3.bf16.msra.mxu1 %v8367_v43  ;;  %v8423_v43 = vld [vmem:[#allocation6 + $0x2b0] sm:$0xff]   ;;  %v8424_v44 = vld [vmem:[#allocation6 + $0x278] sm:$0xff]  }
  0x6e   :  { %7555 = vmatprep.subr.bf16.mxu1 %v8370_v46  ;;  %5261 = vmatprep.mubr.bf16.mxu0 %v8906_v12  ;;  %v8426_v46 = vld [vmem:[#allocation6 + $0x2f8] sm:$0xff]   ;;  %v8448_v12 = vld [vmem:[#allocation6 + $0x368] sm:$0xff]  }
  0x6f   :  { %5301 = vmatprep.mubr.bf16.mxu1 %v8908_v18  ;;  %v8454_v18 = vld [vmem:[#allocation6 + $0x3f0] sm:$0xff]  }
  0x70   :  { %7534 = vmatpush3.bf16.msra.mxu0 %v8369_v45  ;;  %v8425_v45 = vld [vmem:[#allocation6 + $0x238] sm:$0xff]  }
  0x71   :  { %7535 = vmatprep.subr.bf16.mxu0 %v8372_v48  ;;  %7556 = vmatpush3.bf16.msra.mxu1 %v8371_v47  ;;  %v82_v47 = vld [vmem:[#allocation3 + $0x40] sm:$0xff]  ;;  %v83_v48 = vld [vmem:[#allocation3 + $0x48] sm:$0xff] }
  0x72   :  { %7557 = vmatprep.subr.bf16.mxu1 %v8374_v50  ;;  %v8428_v50 = vld [vmem:[#allocation6 + $0x340] sm:$0xff]  }
  0x74   :  { %7536 = vmatpush3.bf16.msra.mxu0 %v8373_v49  ;;  %v8427_v49 = vld [vmem:[#allocation6 + $0x2b8] sm:$0xff]  }
  0x75   :  { %7537 = vmatprep.subr.bf16.mxu0 %v8376_v52  ;;  %7558 = vmatpush3.bf16.msra.mxu1 %v8375_v51  ;;  %v84_v51 = vld [vmem:[#allocation3 + $0x50] sm:$0xff]  ;;  %v85_v52 = vld [vmem:[#allocation3 + $0x58] sm:$0xff] }
  0x76   :  { %7559 = vmatprep.subr.bf16.mxu1 %v8378_v54  ;;  %v8910_v54 = vpack.c.bf16 %v83_v48, %v83_v48  ;;  %v8476_v48 = vld [vmem:[#allocation6 + $0x460] sm:$0xff]  }
  0x78   :  { %7538 = vmatpush3.bf16.msra.mxu0 %v8377_v53  ;;  %v8909_v53 = vpack.c.bf16 %v82_v47, %v82_v47  ;;  %v8475_v47 = vld [vmem:[#allocation6 + $0x498] sm:$0xff]  }
  0x79   :  { %7539 = vmatprep.subr.bf16.mxu0 %v8380_v56  ;;  %7560 = vmatpush3.bf16.msra.mxu1 %v8379_v55  ;;  %v8429_v55 = vld [vmem:[#allocation6 + $0x300] sm:$0xff]  }
  0x7a   :  { %7561 = vmatprep.subr.bf16.mxu1 %v8382_v58  ;;  %v8430_v56 = vld [vmem:[#allocation6 + $0x3c0] sm:$0xff]   ;;  %v8912_v58 = vpack.c.bf16 %v85_v52, %v85_v52  ;;  %v8480_v52 = vld [vmem:[#allocation6 + $0x468] sm:$0xff]  }
  0x7c   :  { %7540 = vmatpush3.bf16.msra.mxu0 %v8381_v57  ;;  %v8911_v57 = vpack.c.bf16 %v84_v51, %v84_v51  ;;  %v8479_v51 = vld [vmem:[#allocation6 + $0x4a0] sm:$0xff]  }
  0x7d   :  { %7541 = vmatprep.subr.bf16.mxu0 %v8384_v60  ;;  %7562 = vmatpush3.bf16.msra.mxu1 %v8383_v59  ;;  %v8431_v59 = vld [vmem:[#allocation6 + $0x380] sm:$0xff]   ;;  %v8432_v60 = vld [vmem:[#allocation6 + $0x348] sm:$0xff]  }
  0x7e   :  { %7563 = vmatprep.subr.bf16.mxu1 %v8386_v62  ;;  %v8434_v62 = vld [vmem:[#allocation6 + $0x3c8] sm:$0xff]  }
  0x80   :  { %7542 = vmatpush3.bf16.msra.mxu0 %v8385_v61  ;;  %v8433_v61 = vld [vmem:[#allocation6 + $0x308] sm:$0xff]  }
  0x81   :  { %7543 = vmatprep.subr.bf16.mxu0 %v8388_v0  ;;  %7564 = vmatpush3.bf16.msra.mxu1 %v8387_v63  ;;  %v8435_v63 = vld [vmem:[#allocation6 + $0x388] sm:$0xff]   ;;  %v8436_v0 = vld [vmem:[#allocation6 + $0x350] sm:$0xff]  }
  0x82   :  { %7565 = vmatprep.subr.bf16.mxu1 %v8390_v2  ;;  %v8438_v2 = vld [vmem:[#allocation6 + $0x3d0] sm:$0xff]  }
  0x84   :  { %7544 = vmatpush3.bf16.msra.mxu0 %v8389_v1  ;;  %v8437_v1 = vld [vmem:[#allocation6 + $0x310] sm:$0xff]  }
  0x85   :  { %7545 = vmatprep.subr.bf16.mxu0 %v8392_v4  ;;  %7566 = vmatpush3.bf16.msra.mxu1 %v8391_v3  ;;  %v8439_v3 = vld [vmem:[#allocation6 + $0x390] sm:$0xff]   ;;  %v8440_v4 = vld [vmem:[#allocation6 + $0x358] sm:$0xff]  }
  0x86   :  { %7567 = vmatprep.subr.bf16.mxu1 %v8394_v6  ;;  %v8442_v6 = vld [vmem:[#allocation6 + $0x3d8] sm:$0xff]  }
  0x88   :  { %7546 = vmatpush3.bf16.msra.mxu0 %v8393_v5  ;;  %v8441_v5 = vld [vmem:[#allocation6 + $0x318] sm:$0xff]  }
  0x89   :  { %7575 = vmatprep.subr.bf16.mxu0 %v8396_v10  ;;  %7568 = vmatpush3.bf16.msra.mxu1 %v8395_v9  ;;  %v8445_v9 = vld [vmem:[#allocation6 + $0x320] sm:$0xff]  }
  0x8a   :  { %7597 = vmatprep.subr.bf16.mxu1 %v8398_v16  ;;  %v8446_v10 = vld [vmem:[#allocation6 + $0x3e0] sm:$0xff]   ;;  %v8452_v16 = vld [vmem:[#allocation6 + $0x370] sm:$0xff]  }
  0x8b   :  { %5262 = vmatmul.mubr.bf16.vlgmr.msra.gmra.mrb[4].mxu0 %v8905_v11  ;;  %v8447_v11 = vld [vmem:[#allocation6 + $0x3a0] sm:$0xff]  }
  0x8c   :  { %7576 = vmatpush3.bf16.msra.mxu0 %v8397_v15  ;;  %5302 = vmatmul.mubr.bf16.vlgmr.msra.gmra.mrb[4].mxu1 %v8907_v17  ;;  %v8451_v15 = vld [vmem:[#allocation6 + $0x3a8] sm:$0xff]   ;;  %v8453_v17 = vld [vmem:[#allocation6 + $0x330] sm:$0xff]  }
  0x8d   :  { %7577 = vmatprep.subr.bf16.mxu0 %v8400_v20  ;;  %7598 = vmatpush3.bf16.msra.mxu1 %v8399_v19  ;;  %v8455_v19 = vld [vmem:[#allocation6 + $0x3b0] sm:$0xff]   ;;  %v8456_v20 = vld [vmem:[#allocation6 + $0x378] sm:$0xff]  }
  0x8e   :  { %7599 = vmatprep.subr.bf16.mxu1 %v8402_v22  ;;  %5341 = vmatprep.mubr.bf16.mxu0 %v8910_v54  ;;  %v8458_v22 = vld [vmem:[#allocation6 + $0x3f8] sm:$0xff]   ;;  %v8482_v54 = vld [vmem:[#allocation6 + $0x4e8] sm:$0xff]  }
  0x8f   :  { %5381 = vmatprep.mubr.bf16.mxu1 %v8912_v58  ;;  %v8486_v58 = vld [vmem:[#allocation6 + $0x4f0] sm:$0xff]  }
  0x90   :  { %7578 = vmatpush3.bf16.msra.mxu0 %v8401_v21  ;;  %v8457_v21 = vld [vmem:[#allocation6 + $0x338] sm:$0xff]  }
  0x91   :  { %7579 = vmatprep.subr.bf16.mxu0 %v8404_v24  ;;  %7600 = vmatpush3.bf16.msra.mxu1 %v8403_v23  ;;  %v86_v23 = vld [vmem:[#allocation3 + $0x60] sm:$0xff]  ;;  %v87_v24 = vld [vmem:[#allocation3 + $0x68] sm:$0xff] }
  0x92   :  { %7601 = vmatprep.subr.bf16.mxu1 %v8406_v26  ;;  %v8460_v26 = vld [vmem:[#allocation6 + $0x440] sm:$0xff]  }
  0x94   :  { %7580 = vmatpush3.bf16.msra.mxu0 %v8405_v25  ;;  %v8459_v25 = vld [vmem:[#allocation6 + $0x3b8] sm:$0xff]  }
  0x95   :  { %7581 = vmatprep.subr.bf16.mxu0 %v8408_v28  ;;  %7602 = vmatpush3.bf16.msra.mxu1 %v8407_v27  ;;  %v88_v27 = vld [vmem:[#allocation3 + $0x70] sm:$0xff]  ;;  %v8913_v28 = vpack.c.bf16 %v86_v23, %v86_v23  ;;  %v8507_v23 = vld [vmem:[#allocation6 + $0x598] sm:$0xff]  }
  0x96   :  { %7603 = vmatprep.subr.bf16.mxu1 %v8410_v30  ;;  %v89_v30 = vld [vmem:[#allocation3 + $0x78] sm:$0xff] }
  0x98   :  { %7582 = vmatpush3.bf16.msra.mxu0 %v8409_v29  ;;  %v8914_v29 = vpack.c.bf16 %v87_v24, %v87_v24  ;;  %v8508_v24 = vld [vmem:[#allocation6 + $0x560] sm:$0xff]  }
  0x99   :  { %7583 = vmatprep.subr.bf16.mxu0 %v8412_v32  ;;  %7604 = vmatpush3.bf16.msra.mxu1 %v8411_v31  ;;  %v8461_v31 = vld [vmem:[#allocation6 + $0x400] sm:$0xff]  }
  0x9a   :  { %7605 = vmatprep.subr.bf16.mxu1 %v8414_v34  ;;  %v8462_v32 = vld [vmem:[#allocation6 + $0x4c0] sm:$0xff]   ;;  %v8916_v34 = vpack.c.bf16 %v89_v30, %v89_v30  ;;  %v8514_v30 = vld [vmem:[#allocation6 + $0x5e8] sm:$0xff]  }
  0x9c   :  { %7584 = vmatpush3.bf16.msra.mxu0 %v8413_v33  ;;  %v8915_v33 = vpack.c.bf16 %v88_v27, %v88_v27  ;;  %v8511_v27 = vld [vmem:[#allocation6 + $0x5a0] sm:$0xff]  }
  0x9d   :  { %7585 = vmatprep.subr.bf16.mxu0 %v8416_v36  ;;  %7606 = vmatpush3.bf16.msra.mxu1 %v8415_v35  ;;  %v8463_v35 = vld [vmem:[#allocation6 + $0x480] sm:$0xff]   ;;  %v8464_v36 = vld [vmem:[#allocation6 + $0x448] sm:$0xff]  }
  0x9e   :  { %7607 = vmatprep.subr.bf16.mxu1 %v8418_v38  ;;  %v8466_v38 = vld [vmem:[#allocation6 + $0x4c8] sm:$0xff]  }
  0xa0   :  { %7586 = vmatpush3.bf16.msra.mxu0 %v8417_v37  ;;  %v8465_v37 = vld [vmem:[#allocation6 + $0x408] sm:$0xff]  }
  0xa1   :  { %7587 = vmatprep.subr.bf16.mxu0 %v8420_v40  ;;  %7608 = vmatpush3.bf16.msra.mxu1 %v8419_v39  ;;  %v8467_v39 = vld [vmem:[#allocation6 + $0x488] sm:$0xff]   ;;  %v8468_v40 = vld [vmem:[#allocation6 + $0x450] sm:$0xff]  }
  0xa2   :  { %7609 = vmatprep.subr.bf16.mxu1 %v8422_v42  ;;  %v8470_v42 = vld [vmem:[#allocation6 + $0x4d0] sm:$0xff]  }
  0xa4   :  { %7588 = vmatpush3.bf16.msra.mxu0 %v8421_v41  ;;  %v8469_v41 = vld [vmem:[#allocation6 + $0x410] sm:$0xff]  }
  0xa5   :  { %7589 = vmatprep.subr.bf16.mxu0 %v8424_v44  ;;  %7610 = vmatpush3.bf16.msra.mxu1 %v8423_v43  ;;  %v8471_v43 = vld [vmem:[#allocation6 + $0x490] sm:$0xff]   ;;  %v8472_v44 = vld [vmem:[#allocation6 + $0x458] sm:$0xff]  }
  0xa6   :  { %7611 = vmatprep.subr.bf16.mxu1 %v8426_v46  ;;  %v8474_v46 = vld [vmem:[#allocation6 + $0x4d8] sm:$0xff]  }
  0xa8   :  { %7590 = vmatpush3.bf16.msra.mxu0 %v8425_v45  ;;  %v8473_v45 = vld [vmem:[#allocation6 + $0x418] sm:$0xff]  }
  0xa9   :  { %7612 = vmatpush3.bf16.msra.mxu1 %v8427_v49  ;;  %7619 = vmatprep.subr.bf16.mxu0 %v8428_v50  ;;  %v8477_v49 = vld [vmem:[#allocation6 + $0x420] sm:$0xff]  }
  0xaa   :  { %7641 = vmatprep.subr.bf16.mxu1 %v8430_v56  ;;  %v8478_v50 = vld [vmem:[#allocation6 + $0x4e0] sm:$0xff]   ;;  %v8484_v56 = vld [vmem:[#allocation6 + $0x470] sm:$0xff]  }
  0xab   :  { %5342 = vmatmul.mubr.bf16.vlgmr.msra.gmra.mrb[8].mxu0 %v8909_v53  ;;  %v8481_v53 = vld [vmem:[#allocation6 + $0x428] sm:$0xff]  }
  0xac   :  { %7620 = vmatpush3.bf16.msra.mxu0 %v8429_v55  ;;  %5382 = vmatmul.mubr.bf16.vlgmr.msra.gmra.mrb[8].mxu1 %v8911_v57  ;;  %v8483_v55 = vld [vmem:[#allocation6 + $0x4a8] sm:$0xff]   ;;  %v8485_v57 = vld [vmem:[#allocation6 + $0x430] sm:$0xff]  }
  0xad   :  { %7621 = vmatprep.subr.bf16.mxu0 %v8432_v60  ;;  %7642 = vmatpush3.bf16.msra.mxu1 %v8431_v59  ;;  %v8487_v59 = vld [vmem:[#allocation6 + $0x4b0] sm:$0xff]   ;;  %v8488_v60 = vld [vmem:[#allocation6 + $0x478] sm:$0xff]  }
  0xae   :  { %7643 = vmatprep.subr.bf16.mxu1 %v8434_v62  ;;  %5421 = vmatprep.mubr.bf16.mxu0 %v8914_v29  ;;  %v8490_v62 = vld [vmem:[#allocation6 + $0x4f8] sm:$0xff]   ;;  %v8513_v29 = vld [vmem:[#allocation6 + $0x528] sm:$0xff]  }
  0xaf   :  { %5461 = vmatprep.mubr.bf16.mxu1 %v8916_v34  ;;  %v8518_v34 = vld [vmem:[#allocation6 + $0x5f0] sm:$0xff]  }
  0xb0   :  { %7622 = vmatpush3.bf16.msra.mxu0 %v8433_v61  ;;  %v8489_v61 = vld [vmem:[#allocation6 + $0x438] sm:$0xff]  }
  0xb1   :  { %7623 = vmatprep.subr.bf16.mxu0 %v8436_v0  ;;  %7644 = vmatpush3.bf16.msra.mxu1 %v8435_v63  ;;  %v90_v63 = vld [vmem:[#allocation3 + $0x80] sm:$0xff]  ;;  %v91_v0 = vld [vmem:[#allocation3 + $0x88] sm:$0xff] }
  0xb2   :  { %7645 = vmatprep.subr.bf16.mxu1 %v8438_v2  ;;  %v8492_v2 = vld [vmem:[#allocation6 + $0x540] sm:$0xff]  }
  0xb4   :  { %7624 = vmatpush3.bf16.msra.mxu0 %v8437_v1  ;;  %v8491_v1 = vld [vmem:[#allocation6 + $0x4b8] sm:$0xff]  }
  0xb5   :  { %7625 = vmatprep.subr.bf16.mxu0 %v8440_v4  ;;  %7646 = vmatpush3.bf16.msra.mxu1 %v8439_v3  ;;  %v8917_v3 = vpack.c.bf16 %v90_v63, %v90_v63  ;;  %v8918_v4 = vpack.c.bf16 %v91_v0, %v91_v0  ;;  %v8539_v63 = vld [vmem:[#allocation6 + $0x698] sm:$0xff]   ;;  %v8540_v0 = vld [vmem:[#allocation6 + $0x660] sm:$0xff]  }
  0xb6   :  { %7647 = vmatprep.subr.bf16.mxu1 %v8442_v6  ;;  %v93_v6 = vld [vmem:[#allocation3 + $0x98] sm:$0xff] }
  0xb8   :  { %7626 = vmatpush3.bf16.msra.mxu0 %v8441_v5  ;;  %v92_v5 = vld [vmem:[#allocation3 + $0x90] sm:$0xff] }
  0xb9   :  { %7627 = vmatprep.subr.bf16.mxu0 %v8444_v8  ;;  %7648 = vmatpush3.bf16.msra.mxu1 %v8443_v7  ;;  %v8493_v7 = vld [vmem:[#allocation6 + $0x500] sm:$0xff]  }
  0xba   :  { %7649 = vmatprep.subr.bf16.mxu1 %v8446_v10  ;;  %v8494_v8 = vld [vmem:[#allocation6 + $0x5c0] sm:$0xff]   ;;  %v8920_v10 = vpack.c.bf16 %v93_v6, %v93_v6  ;;  %v8546_v6 = vld [vmem:[#allocation6 + $0x6e8] sm:$0xff]  }
  0xbc   :  { %7628 = vmatpush3.bf16.msra.mxu0 %v8445_v9  ;;  %v8919_v9 = vpack.c.bf16 %v92_v5, %v92_v5  ;;  %v8545_v5 = vld [vmem:[#allocation6 + $0x628] sm:$0xff]  }
  0xbd   :  { %7629 = vmatprep.subr.bf16.mxu0 %v8448_v12  ;;  %7650 = vmatpush3.bf16.msra.mxu1 %v8447_v11  ;;  %v8495_v11 = vld [vmem:[#allocation6 + $0x580] sm:$0xff]   ;;  %v8496_v12 = vld [vmem:[#allocation6 + $0x548] sm:$0xff]  }
  0xbe   :  { %7651 = vmatprep.subr.bf16.mxu1 %v8450_v14  ;;  %v8498_v14 = vld [vmem:[#allocation6 + $0x5c8] sm:$0xff]  }
  0xc0   :  { %7630 = vmatpush3.bf16.msra.mxu0 %v8449_v13  ;;  %v8497_v13 = vld [vmem:[#allocation6 + $0x508] sm:$0xff]  }
  0xc1   :  { %7631 = vmatprep.subr.bf16.mxu0 %v8452_v16  ;;  %7652 = vmatpush3.bf16.msra.mxu1 %v8451_v15  ;;  %v8499_v15 = vld [vmem:[#allocation6 + $0x588] sm:$0xff]   ;;  %v8500_v16 = vld [vmem:[#allocation6 + $0x550] sm:$0xff]  }
  0xc2   :  { %7653 = vmatprep.subr.bf16.mxu1 %v8454_v18  ;;  %v8502_v18 = vld [vmem:[#allocation6 + $0x5d0] sm:$0xff]  }
  0xc4   :  { %7632 = vmatpush3.bf16.msra.mxu0 %v8453_v17  ;;  %v8501_v17 = vld [vmem:[#allocation6 + $0x510] sm:$0xff]  }
  0xc5   :  { %7633 = vmatprep.subr.bf16.mxu0 %v8456_v20  ;;  %7654 = vmatpush3.bf16.msra.mxu1 %v8455_v19  ;;  %v8503_v19 = vld [vmem:[#allocation6 + $0x590] sm:$0xff]   ;;  %v8504_v20 = vld [vmem:[#allocation6 + $0x558] sm:$0xff]  }
  0xc6   :  { %7655 = vmatprep.subr.bf16.mxu1 %v8458_v22  ;;  %v8506_v22 = vld [vmem:[#allocation6 + $0x5d8] sm:$0xff]  }
  0xc8   :  { %7634 = vmatpush3.bf16.msra.mxu0 %v8457_v21  ;;  %v8505_v21 = vld [vmem:[#allocation6 + $0x518] sm:$0xff]  }
  0xc9   :  { %7656 = vmatpush3.bf16.msra.mxu1 %v8459_v25  ;;  %7663 = vmatprep.subr.bf16.mxu0 %v8460_v26  ;;  %v8509_v25 = vld [vmem:[#allocation6 + $0x520] sm:$0xff]  }
  0xca   :  { %7685 = vmatprep.subr.bf16.mxu1 %v8462_v32  ;;  %v8510_v26 = vld [vmem:[#allocation6 + $0x5e0] sm:$0xff]   ;;  %v8516_v32 = vld [vmem:[#allocation6 + $0x570] sm:$0xff]  }
  0xcb   :  { %5422 = vmatmul.mubr.bf16.vlgmr.msra.gmra.mrb[12].mxu0 %v8913_v28  ;;  %v8512_v28 = vld [vmem:[#allocation6 + $0x568] sm:$0xff]  }
  0xcc   :  { %7664 = vmatpush3.bf16.msra.mxu0 %v8461_v31  ;;  %5462 = vmatmul.mubr.bf16.vlgmr.msra.gmra.mrb[12].mxu1 %v8915_v33  ;;  %v8515_v31 = vld [vmem:[#allocation6 + $0x5a8] sm:$0xff]   ;;  %v8517_v33 = vld [vmem:[#allocation6 + $0x530] sm:$0xff]  }
  0xcd   :  { %7665 = vmatprep.subr.bf16.mxu0 %v8464_v36  ;;  %7686 = vmatpush3.bf16.msra.mxu1 %v8463_v35  ;;  %v8519_v35 = vld [vmem:[#allocation6 + $0x5b0] sm:$0xff]   ;;  %v8520_v36 = vld [vmem:[#allocation6 + $0x578] sm:$0xff]  }
  0xce   :  { %7687 = vmatprep.subr.bf16.mxu1 %v8466_v38  ;;  %5501 = vmatprep.mubr.bf16.mxu0 %v8918_v4  ;;  %v8522_v38 = vld [vmem:[#allocation6 + $0x5f8] sm:$0xff]   ;;  %v8544_v4 = vld [vmem:[#allocation6 + $0x668] sm:$0xff]  }
  0xcf   :  { %5541 = vmatprep.mubr.bf16.mxu1 %v8920_v10  ;;  %v8550_v10 = vld [vmem:[#allocation6 + $0x6f0] sm:$0xff]  }
  0xd0   :  { %7666 = vmatpush3.bf16.msra.mxu0 %v8465_v37  ;;  %v8521_v37 = vld [vmem:[#allocation6 + $0x538] sm:$0xff]  }
  0xd1   :  { %7667 = vmatprep.subr.bf16.mxu0 %v8468_v40  ;;  %7688 = vmatpush3.bf16.msra.mxu1 %v8467_v39  ;;  %v94_v39 = vld [vmem:[#allocation3 + $0xa0] sm:$0xff]  ;;  %v95_v40 = vld [vmem:[#allocation3 + $0xa8] sm:$0xff] }
  0xd2   :  { %7689 = vmatprep.subr.bf16.mxu1 %v8470_v42  ;;  %v8524_v42 = vld [vmem:[#allocation6 + $0x640] sm:$0xff]  }
  0xd4   :  { %7668 = vmatpush3.bf16.msra.mxu0 %v8469_v41  ;;  %v8523_v41 = vld [vmem:[#allocation6 + $0x5b8] sm:$0xff]  }
  0xd5   :  { %7669 = vmatprep.subr.bf16.mxu0 %v8472_v44  ;;  %7690 = vmatpush3.bf16.msra.mxu1 %v8471_v43  ;;  %v96_v43 = vld [vmem:[#allocation3 + $0xb0] sm:$0xff]  ;;  %v97_v44 = vld [vmem:[#allocation3 + $0xb8] sm:$0xff] }
  0xd6   :  { %7691 = vmatprep.subr.bf16.mxu1 %v8474_v46  ;;  %v8922_v46 = vpack.c.bf16 %v95_v40, %v95_v40 }
  0xd8   :  { %7670 = vmatpush3.bf16.msra.mxu0 %v8473_v45  ;;  %v8921_v45 = vpack.c.bf16 %v94_v39, %v94_v39  ;;  %v8571_v39 = vld [vmem:[#allocation6 + $0x798] sm:$0xff]  }
  0xd9   :  { %7671 = vmatprep.subr.bf16.mxu0 %v8476_v48  ;;  %7692 = vmatpush3.bf16.msra.mxu1 %v8475_v47  ;;  %v8525_v47 = vld [vmem:[#allocation6 + $0x600] sm:$0xff]  }
  0xda   :  { %7693 = vmatprep.subr.bf16.mxu1 %v8478_v50  ;;  %v8526_v48 = vld [vmem:[#allocation6 + $0x6c0] sm:$0xff]   ;;  %v8924_v50 = vpack.c.bf16 %v97_v44, %v97_v44 }
  0xdc   :  { %7672 = vmatpush3.bf16.msra.mxu0 %v8477_v49  ;;  %v8923_v49 = vpack.c.bf16 %v96_v43, %v96_v43  ;;  %v8573_v43 = vld [vmem:[#allocation6 + $0x720] sm:$0xff]  }
  0xdd   :  { %7673 = vmatprep.subr.bf16.mxu0 %v8480_v52  ;;  %7694 = vmatpush3.bf16.msra.mxu1 %v8479_v51  ;;  %v8527_v51 = vld [vmem:[#allocation6 + $0x680] sm:$0xff]   ;;  %v8528_v52 = vld [vmem:[#allocation6 + $0x648] sm:$0xff]  }
  0xde   :  { %7695 = vmatprep.subr.bf16.mxu1 %v8482_v54  ;;  %v8530_v54 = vld [vmem:[#allocation6 + $0x6c8] sm:$0xff]  }
  0xe0   :  { %7674 = vmatpush3.bf16.msra.mxu0 %v8481_v53  ;;  %v8529_v53 = vld [vmem:[#allocation6 + $0x608] sm:$0xff]  }
  0xe1   :  { %7675 = vmatprep.subr.bf16.mxu0 %v8484_v56  ;;  %7696 = vmatpush3.bf16.msra.mxu1 %v8483_v55  ;;  %v8531_v55 = vld [vmem:[#allocation6 + $0x688] sm:$0xff]   ;;  %v8532_v56 = vld [vmem:[#allocation6 + $0x650] sm:$0xff]  }
  0xe2   :  { %7697 = vmatprep.subr.bf16.mxu1 %v8486_v58  ;;  %v8534_v58 = vld [vmem:[#allocation6 + $0x6d0] sm:$0xff]  }
  0xe4   :  { %7676 = vmatpush3.bf16.msra.mxu0 %v8485_v57  ;;  %v8533_v57 = vld [vmem:[#allocation6 + $0x610] sm:$0xff]  }
  0xe5   :  { %7677 = vmatprep.subr.bf16.mxu0 %v8488_v60  ;;  %7698 = vmatpush3.bf16.msra.mxu1 %v8487_v59  ;;  %v8535_v59 = vld [vmem:[#allocation6 + $0x690] sm:$0xff]   ;;  %v8536_v60 = vld [vmem:[#allocation6 + $0x658] sm:$0xff]  }
  0xe6   :  { %7699 = vmatprep.subr.bf16.mxu1 %v8490_v62  ;;  %v8538_v62 = vld [vmem:[#allocation6 + $0x6d8] sm:$0xff]  }
  0xe8   :  { %7678 = vmatpush3.bf16.msra.mxu0 %v8489_v61  ;;  %v8537_v61 = vld [vmem:[#allocation6 + $0x618] sm:$0xff]  }
  0xe9   :  { %7707 = vmatprep.subr.bf16.mxu0 %v8492_v2  ;;  %7700 = vmatpush3.bf16.msra.mxu1 %v8491_v1  ;;  %v8541_v1 = vld [vmem:[#allocation6 + $0x620] sm:$0xff]  }
  0xea   :  { %7729 = vmatprep.subr.bf16.mxu1 %v8494_v8  ;;  %v8542_v2 = vld [vmem:[#allocation6 + $0x6e0] sm:$0xff]   ;;  %v8548_v8 = vld [vmem:[#allocation6 + $0x670] sm:$0xff]  }
  0xeb   :  { %5502 = vmatmul.mubr.bf16.vlgmr.msra.gmra.mrb[16].mxu0 %v8917_v3  ;;  %v8543_v3 = vld [vmem:[#allocation6 + $0x6a0] sm:$0xff]  }
  0xec   :  { %7708 = vmatpush3.bf16.msra.mxu0 %v8493_v7  ;;  %5542 = vmatmul.mubr.bf16.vlgmr.msra.gmra.mrb[16].mxu1 %v8919_v9  ;;  %v8547_v7 = vld [vmem:[#allocation6 + $0x6a8] sm:$0xff]   ;;  %v8549_v9 = vld [vmem:[#allocation6 + $0x630] sm:$0xff]  }
  0xed   :  { %7709 = vmatprep.subr.bf16.mxu0 %v8496_v12  ;;  %7730 = vmatpush3.bf16.msra.mxu1 %v8495_v11  ;;  %v8551_v11 = vld [vmem:[#allocation6 + $0x6b0] sm:$0xff]   ;;  %v8552_v12 = vld [vmem:[#allocation6 + $0x678] sm:$0xff]  }
  0xee   :  { %7731 = vmatprep.subr.bf16.mxu1 %v8498_v14  ;;  %5581 = vmatprep.mubr.bf16.mxu0 %v8922_v46  ;;  %v8554_v14 = vld [vmem:[#allocation6 + $0x6f8] sm:$0xff]  }
  0xef   :  { %5621 = vmatprep.mubr.bf16.mxu1 %v8924_v50 }
  0xf0   :  { %7710 = vmatpush3.bf16.msra.mxu0 %v8497_v13  ;;  %v8553_v13 = vld [vmem:[#allocation6 + $0x638] sm:$0xff]  }
  0xf1   :  { %7711 = vmatprep.subr.bf16.mxu0 %v8500_v16  ;;  %7732 = vmatpush3.bf16.msra.mxu1 %v8499_v15  ;;  %v98_v15 = vld [vmem:[#allocation3 + $0xc0] sm:$0xff]  ;;  %v99_v16 = vld [vmem:[#allocation3 + $0xc8] sm:$0xff] }
  0xf2   :  { %7733 = vmatprep.subr.bf16.mxu1 %v8502_v18  ;;  %v8556_v18 = vld [vmem:[#allocation6 + $0x740] sm:$0xff]  }
  0xf4   :  { %7712 = vmatpush3.bf16.msra.mxu0 %v8501_v17  ;;  %v8555_v17 = vld [vmem:[#allocation6 + $0x6b8] sm:$0xff]  }
  0xf5   :  { %7713 = vmatprep.subr.bf16.mxu0 %v8504_v20  ;;  %7734 = vmatpush3.bf16.msra.mxu1 %v8503_v19  ;;  %v100_v19 = vld [vmem:[#allocation3 + $0xd0] sm:$0xff]  ;;  %v8925_v20 = vpack.c.bf16 %v98_v15, %v98_v15 }
  0xf6   :  { %7735 = vmatprep.subr.bf16.mxu1 %v8506_v22  ;;  %v101_v22 = vld [vmem:[#allocation3 + $0xd8] sm:$0xff]  ;;  %v8592_v15 = vld [vmem:[#allocation6 + $0x848] sm:$0xff]  }
  0xf8   :  { %7714 = vmatpush3.bf16.msra.mxu0 %v8505_v21  ;;  %v8926_v21 = vpack.c.bf16 %v99_v16, %v99_v16  ;;  %v8593_v16 = vld [vmem:[#allocation6 + $0x808] sm:$0xff]  }
  0xf9   :  { %7715 = vmatprep.subr.bf16.mxu0 %v8508_v24  ;;  %7736 = vmatpush3.bf16.msra.mxu1 %v8507_v23  ;;  %v8557_v23 = vld [vmem:[#allocation6 + $0x700] sm:$0xff]  }
  0xfa   :  { %7737 = vmatprep.subr.bf16.mxu1 %v8510_v26  ;;  %v8558_v24 = vld [vmem:[#allocation6 + $0x7c0] sm:$0xff]   ;;  %v8928_v26 = vpack.c.bf16 %v101_v22, %v101_v22  ;;  %v8599_v22 = vld [vmem:[#allocation6 + $0x890] sm:$0xff]  }
  0xfc   :  { %7716 = vmatpush3.bf16.msra.mxu0 %v8509_v25  ;;  %v8927_v25 = vpack.c.bf16 %v100_v19, %v100_v19  ;;  %v8596_v19 = vld [vmem:[#allocation6 + $0x850] sm:$0xff]  }
  0xfd   :  { %7717 = vmatprep.subr.bf16.mxu0 %v8512_v28  ;;  %7738 = vmatpush3.bf16.msra.mxu1 %v8511_v27  ;;  %v8559_v27 = vld [vmem:[#allocation6 + $0x780] sm:$0xff]   ;;  %v8560_v28 = vld [vmem:[#allocation6 + $0x748] sm:$0xff]  }
  0xfe   :  { %7739 = vmatprep.subr.bf16.mxu1 %v8514_v30  ;;  %v8562_v30 = vld [vmem:[#allocation6 + $0x7c8] sm:$0xff]  }
 0x100   :  { %7718 = vmatpush3.bf16.msra.mxu0 %v8513_v29  ;;  %v8561_v29 = vld [vmem:[#allocation6 + $0x708] sm:$0xff]  }
 0x101   :  { %7719 = vmatprep.subr.bf16.mxu0 %v8516_v32  ;;  %7740 = vmatpush3.bf16.msra.mxu1 %v8515_v31  ;;  %v8563_v31 = vld [vmem:[#allocation6 + $0x788] sm:$0xff]   ;;  %v8564_v32 = vld [vmem:[#allocation6 + $0x750] sm:$0xff]  }
 0x102   :  { %7741 = vmatprep.subr.bf16.mxu1 %v8518_v34  ;;  %v8566_v34 = vld [vmem:[#allocation6 + $0x7d0] sm:$0xff]  }
 0x104   :  { %7720 = vmatpush3.bf16.msra.mxu0 %v8517_v33  ;;  %v8565_v33 = vld [vmem:[#allocation6 + $0x710] sm:$0xff]  }
 0x105   :  { %7721 = vmatprep.subr.bf16.mxu0 %v8520_v36  ;;  %7742 = vmatpush3.bf16.msra.mxu1 %v8519_v35  ;;  %v8567_v35 = vld [vmem:[#allocation6 + $0x790] sm:$0xff]   ;;  %v8568_v36 = vld [vmem:[#allocation6 + $0x758] sm:$0xff]  }
 0x106   :  { %7743 = vmatprep.subr.bf16.mxu1 %v8522_v38  ;;  %v8570_v38 = vld [vmem:[#allocation6 + $0x7d8] sm:$0xff]  }
 0x108   :  { %7722 = vmatpush3.bf16.msra.mxu0 %v8521_v37  ;;  %v8569_v37 = vld [vmem:[#allocation6 + $0x718] sm:$0xff]  }
 0x109   :  { %7744 = vmatpush3.bf16.msra.mxu1 %v8523_v41  ;;  %7751 = vmatprep.subr.bf16.mxu0 %v8524_v42  ;;  %v8572_v41 = vld [vmem:[#allocation6 + $0x760] sm:$0xff]  }
 0x10a   :  { %7773 = vmatprep.subr.bf16.mxu1 %v8526_v48  ;;  %v8575_v48 = vld [vmem:[#allocation6 + $0x7a0] sm:$0xff]  }
 0x10b   :  { %5582 = vmatmul.mubr.bf16.vlgmr.msra.gmra.mrb[20].mxu0 %v8921_v45  ;;  %v8574_v45 = vld [vmem:[#allocation6 + $0x7e0] sm:$0xff]  }
 0x10c   :  { %7752 = vmatpush3.bf16.msra.mxu0 %v8525_v47  ;;  %5622 = vmatmul.mubr.bf16.vlgmr.msra.gmra.mrb[20].mxu1 %v8923_v49 }
 0x10d   :  { %7753 = vmatprep.subr.bf16.mxu0 %v8528_v52  ;;  %7774 = vmatpush3.bf16.msra.mxu1 %v8527_v51  ;;  %v8576_v51 = vld [vmem:[#allocation6 + $0x768] sm:$0xff]  }
 0x10e   :  { %7775 = vmatprep.subr.bf16.mxu1 %v8530_v54  ;;  %5661 = vmatprep.mubr.bf16.mxu0 %v8926_v21  ;;  %v8577_v54 = vld [vmem:[#allocation6 + $0x728] sm:$0xff]   ;;  %v8598_v21 = vld [vmem:[#allocation6 + $0x8d0] sm:$0xff]  }
 0x10f   :  { %5701 = vmatprep.mubr.bf16.mxu1 %v8928_v26 }
 0x110   :  { %7754 = vmatpush3.bf16.msra.mxu0 %v8529_v53 }
 0x111   :  { %7755 = vmatprep.subr.bf16.mxu0 %v8532_v56  ;;  %7776 = vmatpush3.bf16.msra.mxu1 %v8531_v55  ;;  %v8578_v56 = vld [vmem:[#allocation6 + $0x7e8] sm:$0xff]  }
 0x112   :  { %7777 = vmatprep.subr.bf16.mxu1 %v8534_v58  ;;  %v8579_v58 = vld [vmem:[#allocation6 + $0x7a8] sm:$0xff]  }
 0x114   :  { %7756 = vmatpush3.bf16.msra.mxu0 %v8533_v57 }
 0x115   :  { %7757 = vmatprep.subr.bf16.mxu0 %v8536_v60  ;;  %7778 = vmatpush3.bf16.msra.mxu1 %v8535_v59  ;;  %v8580_v59 = vld [vmem:[#allocation6 + $0x770] sm:$0xff]  }
 0x116   :  { %7779 = vmatprep.subr.bf16.mxu1 %v8538_v62  ;;  %v8581_v60 = vld [vmem:[#allocation6 + $0x730] sm:$0xff]  }
 0x117   :  { %v8583_v62 = vld [vmem:[#allocation6 + $0x7b0] sm:$0xff]  }
 0x118   :  { %7758 = vmatpush3.bf16.msra.mxu0 %v8537_v61  ;;  %v8582_v61 = vld [vmem:[#allocation6 + $0x7f0] sm:$0xff]  }
 0x119   :  { %7759 = vmatprep.subr.bf16.mxu0 %v8540_v0  ;;  %7780 = vmatpush3.bf16.msra.mxu1 %v8539_v63  ;;  %v8584_v63 = vld [vmem:[#allocation6 + $0x778] sm:$0xff]  }
 0x11a   :  { %7781 = vmatprep.subr.bf16.mxu1 %v8542_v2  ;;  %v8585_v0 = vld [vmem:[#allocation6 + $0x738] sm:$0xff]  }
 0x11b   :  { %v102_v2 = vld [vmem:[#allocation3 + $0xe0] sm:$0xff] }
 0x11c   :  { %7760 = vmatpush3.bf16.msra.mxu0 %v8541_v1  ;;  %v8586_v1 = vld [vmem:[#allocation6 + $0x7f8] sm:$0xff]  }
 0x11d   :  { %7761 = vmatprep.subr.bf16.mxu0 %v8544_v4  ;;  %7782 = vmatpush3.bf16.msra.mxu1 %v8543_v3  ;;  %v103_v3 = vld [vmem:[#allocation3 + $0xe8] sm:$0xff]  ;;  %v8587_v4 = vld [vmem:[#allocation6 + $0x7b8] sm:$0xff]  }
 0x11e   :  { %7783 = vmatprep.subr.bf16.mxu1 %v8546_v6  ;;  %v8929_v6 = vpack.c.bf16 %v102_v2, %v102_v2  ;;  %v8623_v2 = vld [vmem:[#allocation6 + $0x980] sm:$0xff]  }
 0x120   :  { %7762 = vmatpush3.bf16.msra.mxu0 %v8545_v5  ;;  %v8588_v5 = vld [vmem:[#allocation6 + $0x840] sm:$0xff]  }
 0x121   :  { %7763 = vmatprep.subr.bf16.mxu0 %v8548_v8  ;;  %7784 = vmatpush3.bf16.msra.mxu1 %v8547_v7  ;;  %v8930_v7 = vpack.c.bf16 %v103_v3, %v103_v3  ;;  %v104_v8 = vld [vmem:[#allocation3 + $0xf0] sm:$0xff] }
 0x122   :  { %7785 = vmatprep.subr.bf16.mxu1 %v8550_v10  ;;  %v8589_v10 = vld [vmem:[#allocation6 + $0x800] sm:$0xff]   ;;  %v8624_v3 = vld [vmem:[#allocation6 + $0x948] sm:$0xff]  }
 0x124   :  { %7764 = vmatpush3.bf16.msra.mxu0 %v8549_v9  ;;  %v105_v9 = vld [vmem:[#allocation3 + $0xf8] sm:$0xff] }
 0x125   :  { %7765 = vmatprep.subr.bf16.mxu0 %v8552_v12  ;;  %7786 = vmatpush3.bf16.msra.mxu1 %v8551_v11  ;;  %v8590_v11 = vld [vmem:[#allocation6 + $0x8c0] sm:$0xff]   ;;  %v8931_v12 = vpack.c.bf16 %v104_v8, %v104_v8  ;;  %v8629_v8 = vld [vmem:[#allocation6 + $0x910] sm:$0xff]  }
 0x126   :  { %7787 = vmatprep.subr.bf16.mxu1 %v8554_v14  ;;  %v8591_v14 = vld [vmem:[#allocation6 + $0x880] sm:$0xff]  }
 0x128   :  { %7766 = vmatpush3.bf16.msra.mxu0 %v8553_v13  ;;  %v8932_v13 = vpack.c.bf16 %v105_v9, %v105_v9  ;;  %v8630_v9 = vld [vmem:[#allocation6 + $0x9d0] sm:$0xff]  }
 0x129   :  { %7788 = vmatpush3.bf16.msra.mxu1 %v8555_v17  ;;  %7795 = vmatprep.subr.bf16.mxu0 %v8556_v18  ;;  %v8594_v17 = vld [vmem:[#allocation6 + $0x8c8] sm:$0xff]  }
 0x12a   :  { %7817 = vmatprep.subr.bf16.mxu1 %v8558_v24  ;;  %v8595_v18 = vld [vmem:[#allocation6 + $0x888] sm:$0xff]   ;;  %v8601_v24 = vld [vmem:[#allocation6 + $0x818] sm:$0xff]  }
 0x12b   :  { %5662 = vmatmul.mubr.bf16.vlgmr.msra.gmra.mrb[24].mxu0 %v8925_v20  ;;  %v8597_v20 = vld [vmem:[#allocation6 + $0x810] sm:$0xff]  }
 0x12c   :  { %7796 = vmatpush3.bf16.msra.mxu0 %v8557_v23  ;;  %5702 = vmatmul.mubr.bf16.vlgmr.msra.gmra.mrb[24].mxu1 %v8927_v25  ;;  %v8600_v23 = vld [vmem:[#allocation6 + $0x858] sm:$0xff]  }
 0x12d   :  { %7797 = vmatprep.subr.bf16.mxu0 %v8560_v28  ;;  %7818 = vmatpush3.bf16.msra.mxu1 %v8559_v27  ;;  %v8602_v25 = vld [vmem:[#allocation6 + $0x8d8] sm:$0xff]  }
 0x12e   :  { %7819 = vmatprep.subr.bf16.mxu1 %v8562_v30  ;;  %5741 = vmatprep.mubr.bf16.mxu0 %v8930_v7  ;;  %v8603_v27 = vld [vmem:[#allocation6 + $0x898] sm:$0xff]   ;;  %v8628_v7 = vld [vmem:[#allocation6 + $0x950] sm:$0xff]  }
 0x12f   :  { %5781 = vmatprep.mubr.bf16.mxu1 %v8932_v13  ;;  %v8634_v13 = vld [vmem:[#allocation6 + $0x9d8] sm:$0xff]  }
 0x130   :  { %7798 = vmatpush3.bf16.msra.mxu0 %v8561_v29  ;;  %v8604_v29 = vld [vmem:[#allocation6 + $0x860] sm:$0xff]  }
 0x131   :  { %7799 = vmatprep.subr.bf16.mxu0 %v8564_v32  ;;  %7820 = vmatpush3.bf16.msra.mxu1 %v8563_v31  ;;  %v8605_v32 = vld [vmem:[#allocation6 + $0x820] sm:$0xff]  }
 0x132   :  { %7821 = vmatprep.subr.bf16.mxu1 %v8566_v34  ;;  %v8606_v34 = vld [vmem:[#allocation6 + $0x8e0] sm:$0xff]  }
 0x134   :  { %7800 = vmatpush3.bf16.msra.mxu0 %v8565_v33 }
 0x135   :  { %7801 = vmatprep.subr.bf16.mxu0 %v8568_v36  ;;  %7822 = vmatpush3.bf16.msra.mxu1 %v8567_v35 }
 0x136   :  { %7823 = vmatprep.subr.bf16.mxu1 %v8570_v38 }
 0x138   :  { %7802 = vmatpush3.bf16.msra.mxu0 %v8569_v37  ;;  %v8607_v37 = vld [vmem:[#allocation6 + $0x8a0] sm:$0xff]  }
 0x139   :  { %7803 = vmatprep.subr.bf16.mxu0 %v8572_v41  ;;  %7824 = vmatpush3.bf16.msra.mxu1 %v8571_v39  ;;  %v8608_v39 = vld [vmem:[#allocation6 + $0x868] sm:$0xff]  }
 0x13a   :  { %7825 = vmatprep.subr.bf16.mxu1 %v8574_v45  ;;  %v8610_v45 = vld [vmem:[#allocation6 + $0x8e8] sm:$0xff]  }
 0x13c   :  { %7804 = vmatpush3.bf16.msra.mxu0 %v8573_v43 }
 0x13d   :  { %7805 = vmatprep.subr.bf16.mxu0 %v8576_v51  ;;  %7826 = vmatpush3.bf16.msra.mxu1 %v8575_v48  ;;  %v8613_v48 = vld [vmem:[#allocation6 + $0x830] sm:$0xff]   ;;  %v8616_v51 = vld [vmem:[#allocation6 + $0x878] sm:$0xff]  }
 0x13e   :  { %v7503_v40 = vpop.f32.mrb[0].mxu0  ;;  %7827 = vmatprep.subr.bf16.mxu1 %v8578_v56  ;;  %v8619_v56 = vld [vmem:[#allocation6 + $0x8b8] sm:$0xff]  }
 0x13f   :  { %v7525_v42 = vpop.f32.mrb[0].mxu1  ;;  %v7504_v44 = vpop.f32.mrb[1].mxu0 }
 0x140   :  { %v7505_v46 = vadd.f32 %v7504_v44, %v7503_v40  ;;  %v7526_v47 = vpop.f32.mrb[1].mxu1  ;;  %v7506_v50 = vpop.f32.mrb[2].mxu0  ;;  %7806 = vmatpush3.bf16.msra.mxu0 %v8577_v54  ;;  %v106_v54 = vld [vmem:[#allocation3 + $0x100] sm:$0xff] }
 0x141   :  { %v7527_v49 = vadd.f32 %v7526_v47, %v7525_v42  ;;  %v7507_v52 = vpop.f32.mrb[3].mxu0  ;;  %v7528_v55 = vpop.f32.mrb[2].mxu1  ;;  %7807 = vmatprep.subr.bf16.mxu0 %v8580_v59  ;;  %7828 = vmatpush3.bf16.msra.mxu1 %v8579_v58  ;;  %v8609_v42 = vld [vmem:[#allocation6 + $0x828] sm:$0xff]   ;;  %v8612_v47 = vld [vmem:[#allocation6 + $0x870] sm:$0xff]  }
 0x142   :  { %v7529_v57 = vpop.f32.mrb[3].mxu1  ;;  %7829 = vmatprep.subr.bf16.mxu1 %v8582_v61  ;;  %v8615_v50 = vld [vmem:[#allocation6 + $0x8b0] sm:$0xff]   ;;  %v8617_v52 = vld [vmem:[#allocation6 + $0x838] sm:$0xff]   ;;  %v107_v55 = vld [vmem:[#allocation3 + $0x108] sm:$0xff] }
 0x143   :  { %v9179_v53 = vadd.f32 %v7527_v49, %v7505_v46  ;;  %v8611_v46 = vld [vmem:[#allocation6 + $0x8a8] sm:$0xff]   ;;  %v8614_v49 = vld [vmem:[#allocation6 + $0x8f0] sm:$0xff]   ;;  %v8620_v57 = vld [vmem:[#allocation6 + $0x940] sm:$0xff]   ;;  %v8934_v61 = vpack.c.bf16 %v107_v55, %v107_v55 }
 0x144   :  { %7808 = vmatpush3.bf16.msra.mxu0 %v8581_v60  ;;  %v108_v58 = vld [vmem:[#allocation3 + $0x110] sm:$0xff]  ;;  %v109_v59 = vld [vmem:[#allocation3 + $0x118] sm:$0xff]  ;;  %v8933_v60 = vpack.c.bf16 %v106_v54, %v106_v54  ;;  %v8655_v54 = vld [vmem:[#allocation6 + $0xa80] sm:$0xff]  }
 0x145   :  { %7809 = vmatprep.subr.bf16.mxu0 %v8584_v63  ;;  %7830 = vmatpush3.bf16.msra.mxu1 %v8583_v62  ;;  %v8621_v62 = vld [vmem:[#allocation6 + $0x900] sm:$0xff]   ;;  %v8656_v55 = vld [vmem:[#allocation6 + $0xa48] sm:$0xff]  }
 0x146   :  { %7831 = vmatprep.subr.bf16.mxu1 %v8586_v1  ;;  %v8622_v63 = vld [vmem:[#allocation6 + $0x9c0] sm:$0xff]   ;;  %v8936_v1 = vpack.c.bf16 %v109_v59, %v109_v59  ;;  %v8660_v59 = vld [vmem:[#allocation6 + $0xa50] sm:$0xff]  }
 0x148   :  { %7810 = vmatpush3.bf16.msra.mxu0 %v8585_v0  ;;  %v8935_v0 = vpack.c.bf16 %v108_v58, %v108_v58  ;;  %v8659_v58 = vld [vmem:[#allocation6 + $0xa88] sm:$0xff]  }
 0x149   :  { %7839 = vmatprep.subr.bf16.mxu0 %v8588_v5  ;;  %7832 = vmatpush3.bf16.msra.mxu1 %v8587_v4  ;;  %v8625_v4 = vld [vmem:[#allocation6 + $0x908] sm:$0xff]  }
 0x14a   :  { %7861 = vmatprep.subr.bf16.mxu1 %v8590_v11  ;;  %v8626_v5 = vld [vmem:[#allocation6 + $0x9c8] sm:$0xff]   ;;  %v8632_v11 = vld [vmem:[#allocation6 + $0x958] sm:$0xff]  }
 0x14b   :  { %5742 = vmatmul.mubr.bf16.vlgmr.msra.gmra.mrb[28].mxu0 %v8929_v6  ;;  %v8627_v6 = vld [vmem:[#allocation6 + $0x988] sm:$0xff]  }
 0x14c   :  { %7840 = vmatpush3.bf16.msra.mxu0 %v8589_v10  ;;  %5782 = vmatmul.mubr.bf16.vlgmr.msra.gmra.mrb[28].mxu1 %v8931_v12  ;;  %v8631_v10 = vld [vmem:[#allocation6 + $0x990] sm:$0xff]   ;;  %v8633_v12 = vld [vmem:[#allocation6 + $0x918] sm:$0xff]  }
 0x14d   :  { %7841 = vmatprep.subr.bf16.mxu0 %v8592_v15  ;;  %7862 = vmatpush3.bf16.msra.mxu1 %v8591_v14  ;;  %v8635_v14 = vld [vmem:[#allocation6 + $0x998] sm:$0xff]  }
 0x14e   :  { %7863 = vmatprep.subr.bf16.mxu1 %v8594_v17  ;;  %5821 = vmatprep.mubr.bf16.mxu0 %v8934_v61  ;;  %v8662_v61 = vld [vmem:[#allocation6 + $0xad0] sm:$0xff]  }
 0x14f   :  { %5861 = vmatprep.mubr.bf16.mxu1 %v8936_v1  ;;  %v8666_v1 = vld [vmem:[#allocation6 + $0xad8] sm:$0xff]  }
 0x150   :  { %7842 = vmatpush3.bf16.msra.mxu0 %v8593_v16  ;;  %v8636_v16 = vld [vmem:[#allocation6 + $0x960] sm:$0xff]  }
 0x151   :  { %7843 = vmatprep.subr.bf16.mxu0 %v8596_v19  ;;  %7864 = vmatpush3.bf16.msra.mxu1 %v8595_v18  ;;  %v8637_v18 = vld [vmem:[#allocation6 + $0x920] sm:$0xff]  }
 0x152   :  { %7865 = vmatprep.subr.bf16.mxu1 %v8598_v21  ;;  %v8638_v21 = vld [vmem:[#allocation6 + $0x9e0] sm:$0xff]  }
 0x154   :  { %7844 = vmatpush3.bf16.msra.mxu0 %v8597_v20 }
 0x155   :  { %7845 = vmatprep.subr.bf16.mxu0 %v8600_v23  ;;  %7866 = vmatpush3.bf16.msra.mxu1 %v8599_v22  ;;  %v8639_v23 = vld [vmem:[#allocation6 + $0x9a0] sm:$0xff]  }
 0x156   :  { %7867 = vmatprep.subr.bf16.mxu1 %v8602_v25 }
 0x158   :  { %7846 = vmatpush3.bf16.msra.mxu0 %v8601_v24 }
 0x159   :  { %7847 = vmatprep.subr.bf16.mxu0 %v8604_v29  ;;  %7868 = vmatpush3.bf16.msra.mxu1 %v8603_v27 }
 0x15a   :  { %7869 = vmatprep.subr.bf16.mxu1 %v8606_v34  ;;  %v8643_v34 = vld [vmem:[#allocation6 + $0x9a8] sm:$0xff]  }
 0x15c   :  { %7848 = vmatpush3.bf16.msra.mxu0 %v8605_v32 }
 0x15d   :  { %7849 = vmatprep.subr.bf16.mxu0 %v8608_v39  ;;  %7870 = vmatpush3.bf16.msra.mxu1 %v8607_v37  ;;  %v8646_v37 = vld [vmem:[#allocation6 + $0x9f0] sm:$0xff]   ;;  %v8648_v39 = vld [vmem:[#allocation6 + $0x978] sm:$0xff]  }
 0x15e   :  { %v7547_v26 = vpop.f32.mrb[4].mxu0  ;;  %7871 = vmatprep.subr.bf16.mxu1 %v8610_v45  ;;  %v8652_v45 = vld [vmem:[#allocation6 + $0xa40] sm:$0xff]  }
 0x15f   :  { %v7548_v28 = vpop.f32.mrb[5].mxu0  ;;  %v7569_v33 = vpop.f32.mrb[4].mxu1 }
 0x160   :  { %v7549_v30 = vadd.f32 %v7548_v28, %v7547_v26  ;;  %v7550_v31 = vpop.f32.mrb[6].mxu0  ;;  %v7570_v38 = vpop.f32.mrb[5].mxu1  ;;  %7850 = vmatpush3.bf16.msra.mxu0 %v8609_v42  ;;  %v8640_v26 = vld [vmem:[#allocation6 + $0x968] sm:$0xff]   ;;  %v110_v42 = vld [vmem:[#allocation3 + $0x120] sm:$0xff] }
 0x161   :  { %v7551_v36 = vpop.f32.mrb[7].mxu0  ;;  %v7571_v40 = vadd.f32 %v7570_v38, %v7569_v33  ;;  %v7572_v41 = vpop.f32.mrb[6].mxu1  ;;  %7851 = vmatprep.subr.bf16.mxu0 %v8612_v47  ;;  %7872 = vmatpush3.bf16.msra.mxu1 %v8611_v46  ;;  %v8641_v28 = vld [vmem:[#allocation6 + $0x928] sm:$0xff]   ;;  %v8647_v38 = vld [vmem:[#allocation6 + $0x9b0] sm:$0xff]   ;;  %v8937_v47 = vpack.c.bf16 %v110_v42, %v110_v42  ;;  %v8687_v42 = vld [vmem:[#allocation6 + $0xb80] sm:$0xff]  }
 0x162   :  { %v5264_v35 = vadd.f32 %v7549_v30, %v9179_v53  ;;  %v7573_v43 = vpop.f32.mrb[7].mxu1  ;;  %7873 = vmatprep.subr.bf16.mxu1 %v8614_v49  ;;  %v8618_v53 = vld [vmem:[#allocation6 + $0x8f8] sm:$0xff]   ;;  %v8642_v31 = vld [vmem:[#allocation6 + $0x9e8] sm:$0xff]   ;;  %v8645_v36 = vld [vmem:[#allocation6 + $0x930] sm:$0xff]  }
 0x163   :  { %v8650_v41 = vld [vmem:[#allocation6 + $0x9f8] sm:$0xff]   ;;  %v111_v43 = vld [vmem:[#allocation3 + $0x128] sm:$0xff]  ;;  %v112_v46 = vld [vmem:[#allocation3 + $0x130] sm:$0xff] }
 0x164   :  { %v9182_v44 = vadd.f32 %v7571_v40, %v5264_v35  ;;  %7852 = vmatpush3.bf16.msra.mxu0 %v8613_v48  ;;  %v8644_v35 = vld [vmem:[#allocation6 + $0x970] sm:$0xff]   ;;  %v8649_v40 = vld [vmem:[#allocation6 + $0x938] sm:$0xff]   ;;  %v8938_v48 = vpack.c.bf16 %v111_v43, %v111_v43  ;;  %v8688_v43 = vld [vmem:[#allocation6 + $0xb48] sm:$0xff]  }
 0x165   :  { %7853 = vmatprep.subr.bf16.mxu0 %v8616_v51  ;;  %7874 = vmatpush3.bf16.msra.mxu1 %v8615_v50  ;;  %v113_v49 = vld [vmem:[#allocation3 + $0x138] sm:$0xff]  ;;  %v8653_v50 = vld [vmem:[#allocation6 + $0xa00] sm:$0xff]  }
 0x166   :  { %7875 = vmatprep.subr.bf16.mxu1 %v8618_v53  ;;  %v8654_v51 = vld [vmem:[#allocation6 + $0xac0] sm:$0xff]   ;;  %v8940_v53 = vpack.c.bf16 %v113_v49, %v113_v49  ;;  %v8694_v49 = vld [vmem:[#allocation6 + $0xbd0] sm:$0xff]  }
 0x168   :  { %7854 = vmatpush3.bf16.msra.mxu0 %v8617_v52  ;;  %v8939_v52 = vpack.c.bf16 %v112_v46, %v112_v46  ;;  %v8691_v46 = vld [vmem:[#allocation6 + $0xb88] sm:$0xff]  }
 0x169   :  { %7876 = vmatpush3.bf16.msra.mxu1 %v8619_v56  ;;  %7883 = vmatprep.subr.bf16.mxu0 %v8620_v57  ;;  %v8657_v56 = vld [vmem:[#allocation6 + $0xa08] sm:$0xff]  }
 0x16a   :  { %7905 = vmatprep.subr.bf16.mxu1 %v8622_v63  ;;  %v8658_v57 = vld [vmem:[#allocation6 + $0xac8] sm:$0xff]   ;;  %v8664_v63 = vld [vmem:[#allocation6 + $0xa58] sm:$0xff]  }
 0x16b   :  { %5822 = vmatmul.mubr.bf16.vlgmr.msra.gmra.mrb[32].mxu0 %v8933_v60  ;;  %v8661_v60 = vld [vmem:[#allocation6 + $0xa10] sm:$0xff]  }
 0x16c   :  { %7884 = vmatpush3.bf16.msra.mxu0 %v8621_v62  ;;  %5862 = vmatmul.mubr.bf16.vlgmr.msra.gmra.mrb[32].mxu1 %v8935_v0  ;;  %v8663_v62 = vld [vmem:[#allocation6 + $0xa90] sm:$0xff]   ;;  %v8665_v0 = vld [vmem:[#allocation6 + $0xa18] sm:$0xff]  }
 0x16d   :  { %7885 = vmatprep.subr.bf16.mxu0 %v8624_v3  ;;  %7906 = vmatpush3.bf16.msra.mxu1 %v8623_v2  ;;  %v8667_v3 = vld [vmem:[#allocation6 + $0xa98] sm:$0xff]  }
 0x16e   :  { %7907 = vmatprep.subr.bf16.mxu1 %v8626_v5  ;;  %5901 = vmatprep.mubr.bf16.mxu0 %v8938_v48  ;;  %v8668_v5 = vld [vmem:[#allocation6 + $0xa60] sm:$0xff]   ;;  %v8693_v48 = vld [vmem:[#allocation6 + $0xb10] sm:$0xff]  }
 0x16f   :  { %5941 = vmatprep.mubr.bf16.mxu1 %v8940_v53  ;;  %v8698_v53 = vld [vmem:[#allocation6 + $0xbd8] sm:$0xff]  }
 0x170   :  { %7886 = vmatpush3.bf16.msra.mxu0 %v8625_v4 }
 0x171   :  { %7887 = vmatprep.subr.bf16.mxu0 %v8628_v7  ;;  %7908 = vmatpush3.bf16.msra.mxu1 %v8627_v6 }
 0x172   :  { %7909 = vmatprep.subr.bf16.mxu1 %v8630_v9 }
 0x174   :  { %7888 = vmatpush3.bf16.msra.mxu0 %v8629_v8  ;;  %v8669_v8 = vld [vmem:[#allocation6 + $0xa20] sm:$0xff]  }
 0x175   :  { %7889 = vmatprep.subr.bf16.mxu0 %v8632_v11  ;;  %7910 = vmatpush3.bf16.msra.mxu1 %v8631_v10  ;;  %v8670_v10 = vld [vmem:[#allocation6 + $0xae0] sm:$0xff]  }
 0x176   :  { %7911 = vmatprep.subr.bf16.mxu1 %v8634_v13  ;;  %v8671_v13 = vld [vmem:[#allocation6 + $0xaa0] sm:$0xff]  }
 0x178   :  { %7890 = vmatpush3.bf16.msra.mxu0 %v8633_v12 }
 0x179   :  { %7891 = vmatprep.subr.bf16.mxu0 %v8636_v16  ;;  %7912 = vmatpush3.bf16.msra.mxu1 %v8635_v14 }
 0x17a   :  { %7913 = vmatprep.subr.bf16.mxu1 %v8638_v21  ;;  %v8674_v21 = vld [vmem:[#allocation6 + $0xae8] sm:$0xff]  }
 0x17c   :  { %7892 = vmatpush3.bf16.msra.mxu0 %v8637_v18  ;;  %v8673_v18 = vld [vmem:[#allocation6 + $0xa28] sm:$0xff]  }
 0x17d   :  { %7893 = vmatprep.subr.bf16.mxu0 %v8640_v26  ;;  %7914 = vmatpush3.bf16.msra.mxu1 %v8639_v23  ;;  %v8676_v23 = vld [vmem:[#allocation6 + $0xa70] sm:$0xff]  }
 0x17e   :  { %v7591_v15 = vpop.f32.mrb[8].mxu0  ;;  %7915 = vmatprep.subr.bf16.mxu1 %v8642_v31  ;;  %v8679_v26 = vld [vmem:[#allocation6 + $0xab0] sm:$0xff]   ;;  %v115_v31 = vld [vmem:[#allocation3 + $0x148] sm:$0xff] }
 0x17f   :  { %v7592_v17 = vpop.f32.mrb[9].mxu0  ;;  %v7613_v22 = vpop.f32.mrb[8].mxu1 }
 0x180   :  { %v7593_v19 = vadd.f32 %v7592_v17, %v7591_v15  ;;  %v7594_v20 = vpop.f32.mrb[10].mxu0  ;;  %v7614_v27 = vpop.f32.mrb[9].mxu1  ;;  %7894 = vmatpush3.bf16.msra.mxu0 %v8641_v28  ;;  %v8672_v15 = vld [vmem:[#allocation6 + $0xa68] sm:$0xff]   ;;  %v8681_v28 = vld [vmem:[#allocation6 + $0xa38] sm:$0xff]  }
 0x181   :  { %v7595_v25 = vpop.f32.mrb[11].mxu0  ;;  %v7615_v29 = vadd.f32 %v7614_v27, %v7613_v22  ;;  %v7616_v30 = vpop.f32.mrb[10].mxu1  ;;  %7895 = vmatprep.subr.bf16.mxu0 %v8644_v35  ;;  %7916 = vmatpush3.bf16.msra.mxu1 %v8643_v34  ;;  %v8675_v22 = vld [vmem:[#allocation6 + $0xaa8] sm:$0xff]   ;;  %v8680_v27 = vld [vmem:[#allocation6 + $0xa78] sm:$0xff]   ;;  %v8942_v35 = vpack.c.bf16 %v115_v31, %v115_v31 }
 0x182   :  { %v5344_v24 = vadd.f32 %v7593_v19, %v9182_v44  ;;  %v7617_v32 = vpop.f32.mrb[11].mxu1  ;;  %7917 = vmatprep.subr.bf16.mxu1 %v8646_v37  ;;  %v8651_v44 = vld [vmem:[#allocation6 + $0x9b8] sm:$0xff]   ;;  %v8678_v25 = vld [vmem:[#allocation6 + $0xaf0] sm:$0xff]   ;;  %v8720_v31 = vld [vmem:[#allocation6 + $0xc48] sm:$0xff]  }
 0x183   :  { %v114_v30 = vld [vmem:[#allocation3 + $0x140] sm:$0xff]  ;;  %v117_v37 = vld [vmem:[#allocation3 + $0x158] sm:$0xff] }
 0x184   :  { %v9185_v33 = vadd.f32 %v7615_v29, %v5344_v24  ;;  %7896 = vmatpush3.bf16.msra.mxu0 %v8645_v36  ;;  %v8677_v24 = vld [vmem:[#allocation6 + $0xa30] sm:$0xff]   ;;  %v8682_v29 = vld [vmem:[#allocation6 + $0xaf8] sm:$0xff]   ;;  %v8941_v34 = vpack.c.bf16 %v114_v30, %v114_v30  ;;  %v116_v36 = vld [vmem:[#allocation3 + $0x150] sm:$0xff] }
 0x185   :  { %7897 = vmatprep.subr.bf16.mxu0 %v8648_v39  ;;  %7918 = vmatpush3.bf16.msra.mxu1 %v8647_v38  ;;  %v8683_v32 = vld [vmem:[#allocation6 + $0xab8] sm:$0xff]   ;;  %v8685_v38 = vld [vmem:[#allocation6 + $0xb00] sm:$0xff]  }
 0x186   :  { %7919 = vmatprep.subr.bf16.mxu1 %v8650_v41  ;;  %v8686_v39 = vld [vmem:[#allocation6 + $0xbc0] sm:$0xff]   ;;  %v8944_v41 = vpack.c.bf16 %v117_v37, %v117_v37  ;;  %v8726_v37 = vld [vmem:[#allocation6 + $0xcd0] sm:$0xff]  }
 0x187   :  { %v8719_v30 = vld [vmem:[#allocation6 + $0xc80] sm:$0xff]  }
 0x188   :  { %7898 = vmatpush3.bf16.msra.mxu0 %v8649_v40  ;;  %v8943_v40 = vpack.c.bf16 %v116_v36, %v116_v36  ;;  %v8725_v36 = vld [vmem:[#allocation6 + $0xc10] sm:$0xff]  }
 0x189   :  { %7920 = vmatpush3.bf16.msra.mxu1 %v8651_v44  ;;  %7927 = vmatprep.subr.bf16.mxu0 %v8652_v45  ;;  %v8689_v44 = vld [vmem:[#allocation6 + $0xb08] sm:$0xff]  }
 0x18a   :  { %7949 = vmatprep.subr.bf16.mxu1 %v8654_v51  ;;  %v8690_v45 = vld [vmem:[#allocation6 + $0xbc8] sm:$0xff]   ;;  %v8696_v51 = vld [vmem:[#allocation6 + $0xb58] sm:$0xff]  }
 0x18b   :  { %5902 = vmatmul.mubr.bf16.vlgmr.msra.gmra.mrb[36].mxu0 %v8937_v47  ;;  %v8692_v47 = vld [vmem:[#allocation6 + $0xb50] sm:$0xff]  }
 0x18c   :  { %7928 = vmatpush3.bf16.msra.mxu0 %v8653_v50  ;;  %5942 = vmatmul.mubr.bf16.vlgmr.msra.gmra.mrb[36].mxu1 %v8939_v52  ;;  %v8695_v50 = vld [vmem:[#allocation6 + $0xb90] sm:$0xff]   ;;  %v8697_v52 = vld [vmem:[#allocation6 + $0xb18] sm:$0xff]  }
 0x18d   :  { %7929 = vmatprep.subr.bf16.mxu0 %v8656_v55  ;;  %7950 = vmatpush3.bf16.msra.mxu1 %v8655_v54  ;;  %v8699_v55 = vld [vmem:[#allocation6 + $0xb98] sm:$0xff]  }
 0x18e   :  { %7951 = vmatprep.subr.bf16.mxu1 %v8658_v57  ;;  %5981 = vmatprep.mubr.bf16.mxu0 %v8942_v35  ;;  %v8700_v57 = vld [vmem:[#allocation6 + $0xb60] sm:$0xff]   ;;  %v8724_v35 = vld [vmem:[#allocation6 + $0xc50] sm:$0xff]  }
 0x18f   :  { %6021 = vmatprep.mubr.bf16.mxu1 %v8944_v41  ;;  %v8730_v41 = vld [vmem:[#allocation6 + $0xcd8] sm:$0xff]  }
 0x190   :  { %7930 = vmatpush3.bf16.msra.mxu0 %v8657_v56 }
 0x191   :  { %7931 = vmatprep.subr.bf16.mxu0 %v8660_v59  ;;  %7952 = vmatpush3.bf16.msra.mxu1 %v8659_v58 }
 0x192   :  { %7953 = vmatprep.subr.bf16.mxu1 %v8662_v61 }
 0x194   :  { %7932 = vmatpush3.bf16.msra.mxu0 %v8661_v60  ;;  %v8701_v60 = vld [vmem:[#allocation6 + $0xb20] sm:$0xff]  }
 0x195   :  { %7933 = vmatprep.subr.bf16.mxu0 %v8664_v63  ;;  %7954 = vmatpush3.bf16.msra.mxu1 %v8663_v62  ;;  %v8702_v62 = vld [vmem:[#allocation6 + $0xbe0] sm:$0xff]  }
 0x196   :  { %7955 = vmatprep.subr.bf16.mxu1 %v8666_v1  ;;  %v8703_v1 = vld [vmem:[#allocation6 + $0xba0] sm:$0xff]  }
 0x198   :  { %7934 = vmatpush3.bf16.msra.mxu0 %v8665_v0 }
 0x199   :  { %7935 = vmatprep.subr.bf16.mxu0 %v8668_v5  ;;  %7956 = vmatpush3.bf16.msra.mxu1 %v8667_v3  ;;  %v8704_v3 = vld [vmem:[#allocation6 + $0xb68] sm:$0xff]  }
 0x19a   :  { %7957 = vmatprep.subr.bf16.mxu1 %v8670_v10  ;;  %v8707_v10 = vld [vmem:[#allocation6 + $0xba8] sm:$0xff]  }
 0x19c   :  { %7936 = vmatpush3.bf16.msra.mxu0 %v8669_v8 }
 0x19d   :  { %7937 = vmatprep.subr.bf16.mxu0 %v8672_v15  ;;  %7958 = vmatpush3.bf16.msra.mxu1 %v8671_v13  ;;  %v8710_v13 = vld [vmem:[#allocation6 + $0xbf0] sm:$0xff]   ;;  %v8712_v15 = vld [vmem:[#allocation6 + $0xb78] sm:$0xff]  }
 0x19e   :  { %v7635_v2 = vpop.f32.mrb[12].mxu0  ;;  %7959 = vmatprep.subr.bf16.mxu1 %v8674_v21  ;;  %v8716_v21 = vld [vmem:[#allocation6 + $0xc40] sm:$0xff]  }
 0x19f   :  { %v7636_v4 = vpop.f32.mrb[13].mxu0  ;;  %v7657_v9 = vpop.f32.mrb[12].mxu1 }
 0x1a0   :  { %v7637_v6 = vadd.f32 %v7636_v4, %v7635_v2  ;;  %v7638_v7 = vpop.f32.mrb[14].mxu0  ;;  %v7658_v14 = vpop.f32.mrb[13].mxu1  ;;  %7938 = vmatpush3.bf16.msra.mxu0 %v8673_v18  ;;  %v118_v18 = vld [vmem:[#allocation3 + $0x160] sm:$0xff] }
 0x1a1   :  { %v7639_v12 = vpop.f32.mrb[15].mxu0  ;;  %v7659_v16 = vadd.f32 %v7658_v14, %v7657_v9  ;;  %v7660_v17 = vpop.f32.mrb[14].mxu1  ;;  %7939 = vmatprep.subr.bf16.mxu0 %v8676_v23  ;;  %7960 = vmatpush3.bf16.msra.mxu1 %v8675_v22  ;;  %v8706_v9 = vld [vmem:[#allocation6 + $0xbe8] sm:$0xff]   ;;  %v8711_v14 = vld [vmem:[#allocation6 + $0xbb0] sm:$0xff]  }
 0x1a2   :  { %v5424_v11 = vadd.f32 %v7637_v6, %v9185_v33  ;;  %v7661_v19 = vpop.f32.mrb[15].mxu1  ;;  %7961 = vmatprep.subr.bf16.mxu1 %v8678_v25  ;;  %v8684_v33 = vld [vmem:[#allocation6 + $0xb40] sm:$0xff]   ;;  %v8705_v6 = vld [vmem:[#allocation6 + $0xb28] sm:$0xff]   ;;  %v8709_v12 = vld [vmem:[#allocation6 + $0xb30] sm:$0xff]  }
 0x1a3   :  { %v8714_v17 = vld [vmem:[#allocation6 + $0xbf8] sm:$0xff]   ;;  %v119_v19 = vld [vmem:[#allocation3 + $0x168] sm:$0xff]  ;;  %v120_v22 = vld [vmem:[#allocation3 + $0x170] sm:$0xff] }
 0x1a4   :  { %v9188_v20 = vadd.f32 %v7659_v16, %v5424_v11  ;;  %7940 = vmatpush3.bf16.msra.mxu0 %v8677_v24  ;;  %v8708_v11 = vld [vmem:[#allocation6 + $0xb70] sm:$0xff]   ;;  %v8713_v16 = vld [vmem:[#allocation6 + $0xb38] sm:$0xff]   ;;  %v8945_v24 = vpack.c.bf16 %v118_v18, %v118_v18  ;;  %v8946_v25 = vpack.c.bf16 %v119_v19, %v119_v19  ;;  %v8751_v18 = vld [vmem:[#allocation6 + $0xd80] sm:$0xff]  }
 0x1a5   :  { %7941 = vmatprep.subr.bf16.mxu0 %v8680_v27  ;;  %7962 = vmatpush3.bf16.msra.mxu1 %v8679_v26  ;;  %v121_v23 = vld [vmem:[#allocation3 + $0x178] sm:$0xff]  ;;  %v8717_v26 = vld [vmem:[#allocation6 + $0xc00] sm:$0xff]   ;;  %v8752_v19 = vld [vmem:[#allocation6 + $0xd48] sm:$0xff]  }
 0x1a6   :  { %7963 = vmatprep.subr.bf16.mxu1 %v8682_v29  ;;  %v8718_v27 = vld [vmem:[#allocation6 + $0xcc0] sm:$0xff]   ;;  %v8948_v29 = vpack.c.bf16 %v121_v23, %v121_v23  ;;  %v8756_v23 = vld [vmem:[#allocation6 + $0xd50] sm:$0xff]  }
 0x1a8   :  { %7942 = vmatpush3.bf16.msra.mxu0 %v8681_v28  ;;  %v8947_v28 = vpack.c.bf16 %v120_v22, %v120_v22  ;;  %v8755_v22 = vld [vmem:[#allocation6 + $0xd88] sm:$0xff]  }
 0x1a9   :  { %7971 = vmatprep.subr.bf16.mxu0 %v8684_v33  ;;  %7964 = vmatpush3.bf16.msra.mxu1 %v8683_v32  ;;  %v8721_v32 = vld [vmem:[#allocation6 + $0xc08] sm:$0xff]  }
 0x1aa   :  { %7993 = vmatprep.subr.bf16.mxu1 %v8686_v39  ;;  %v8722_v33 = vld [vmem:[#allocation6 + $0xcc8] sm:$0xff]   ;;  %v8728_v39 = vld [vmem:[#allocation6 + $0xc58] sm:$0xff]  }
 0x1ab   :  { %5982 = vmatmul.mubr.bf16.vlgmr.msra.gmra.mrb[40].mxu0 %v8941_v34  ;;  %v8723_v34 = vld [vmem:[#allocation6 + $0xc88] sm:$0xff]  }
 0x1ac   :  { %7972 = vmatpush3.bf16.msra.mxu0 %v8685_v38  ;;  %6022 = vmatmul.mubr.bf16.vlgmr.msra.gmra.mrb[40].mxu1 %v8943_v40  ;;  %v8727_v38 = vld [vmem:[#allocation6 + $0xc90] sm:$0xff]   ;;  %v8729_v40 = vld [vmem:[#allocation6 + $0xc18] sm:$0xff]  }
 0x1ad   :  { %7973 = vmatprep.subr.bf16.mxu0 %v8688_v43  ;;  %7994 = vmatpush3.bf16.msra.mxu1 %v8687_v42  ;;  %v8731_v42 = vld [vmem:[#allocation6 + $0xc98] sm:$0xff]  }
 0x1ae   :  { %7995 = vmatprep.subr.bf16.mxu1 %v8690_v45  ;;  %6061 = vmatprep.mubr.bf16.mxu0 %v8946_v25  ;;  %v8758_v25 = vld [vmem:[#allocation6 + $0xdd0] sm:$0xff]  }
 0x1af   :  { %6101 = vmatprep.mubr.bf16.mxu1 %v8948_v29  ;;  %v8762_v29 = vld [vmem:[#allocation6 + $0xdd8] sm:$0xff]  }
 0x1b0   :  { %7974 = vmatpush3.bf16.msra.mxu0 %v8689_v44  ;;  %v8732_v44 = vld [vmem:[#allocation6 + $0xc60] sm:$0xff]  }
 0x1b1   :  { %7975 = vmatprep.subr.bf16.mxu0 %v8692_v47  ;;  %7996 = vmatpush3.bf16.msra.mxu1 %v8691_v46  ;;  %v8733_v46 = vld [vmem:[#allocation6 + $0xc20] sm:$0xff]  }
 0x1b2   :  { %7997 = vmatprep.subr.bf16.mxu1 %v8694_v49  ;;  %v8734_v49 = vld [vmem:[#allocation6 + $0xce0] sm:$0xff]  }
 0x1b4   :  { %7976 = vmatpush3.bf16.msra.mxu0 %v8693_v48 }
 0x1b5   :  { %7977 = vmatprep.subr.bf16.mxu0 %v8696_v51  ;;  %7998 = vmatpush3.bf16.msra.mxu1 %v8695_v50  ;;  %v8735_v51 = vld [vmem:[#allocation6 + $0xca0] sm:$0xff]  }
 0x1b6   :  { %7999 = vmatprep.subr.bf16.mxu1 %v8698_v53 }
 0x1b8   :  { %7978 = vmatpush3.bf16.msra.mxu0 %v8697_v52 }
 0x1b9   :  { %7979 = vmatprep.subr.bf16.mxu0 %v8700_v57  ;;  %8000 = vmatpush3.bf16.msra.mxu1 %v8699_v55 }
 0x1ba   :  { %8001 = vmatprep.subr.bf16.mxu1 %v8702_v62  ;;  %v8739_v62 = vld [vmem:[#allocation6 + $0xca8] sm:$0xff]  }
 0x1bc   :  { %7980 = vmatpush3.bf16.msra.mxu0 %v8701_v60 }
 0x1bd   :  { %7981 = vmatprep.subr.bf16.mxu0 %v8704_v3  ;;  %8002 = vmatpush3.bf16.msra.mxu1 %v8703_v1  ;;  %v8742_v1 = vld [vmem:[#allocation6 + $0xcf0] sm:$0xff]   ;;  %v8744_v3 = vld [vmem:[#allocation6 + $0xc78] sm:$0xff]  }
 0x1be   :  { %v7679_v54 = vpop.f32.mrb[16].mxu0  ;;  %8003 = vmatprep.subr.bf16.mxu1 %v8706_v9  ;;  %v8748_v9 = vld [vmem:[#allocation6 + $0xd40] sm:$0xff]  }
 0x1bf   :  { %v7680_v56 = vpop.f32.mrb[17].mxu0  ;;  %v7701_v61 = vpop.f32.mrb[16].mxu1 }
 0x1c0   :  { %v7681_v58 = vadd.f32 %v7680_v56, %v7679_v54  ;;  %v7682_v59 = vpop.f32.mrb[18].mxu0  ;;  %v7702_v2 = vpop.f32.mrb[17].mxu1  ;;  %7982 = vmatpush3.bf16.msra.mxu0 %v8705_v6  ;;  %v8736_v54 = vld [vmem:[#allocation6 + $0xc68] sm:$0xff]   ;;  %v122_v6 = vld [vmem:[#allocation3 + $0x180] sm:$0xff] }
 0x1c1   :  { %v7683_v0 = vpop.f32.mrb[19].mxu0  ;;  %v7703_v4 = vadd.f32 %v7702_v2, %v7701_v61  ;;  %v7704_v5 = vpop.f32.mrb[18].mxu1  ;;  %7983 = vmatprep.subr.bf16.mxu0 %v8708_v11  ;;  %8004 = vmatpush3.bf16.msra.mxu1 %v8707_v10  ;;  %v8737_v56 = vld [vmem:[#allocation6 + $0xc28] sm:$0xff]   ;;  %v8743_v2 = vld [vmem:[#allocation6 + $0xcb0] sm:$0xff]   ;;  %v8949_v11 = vpack.c.bf16 %v122_v6, %v122_v6 }
 0x1c2   :  { %v5504_v63 = vadd.f32 %v7681_v58, %v9188_v20  ;;  %v7705_v7 = vpop.f32.mrb[19].mxu1  ;;  %8005 = vmatprep.subr.bf16.mxu1 %v8710_v13  ;;  %v8715_v20 = vld [vmem:[#allocation6 + $0xbb8] sm:$0xff]   ;;  %v8738_v59 = vld [vmem:[#allocation6 + $0xce8] sm:$0xff]   ;;  %v8741_v0 = vld [vmem:[#allocation6 + $0xc30] sm:$0xff]  }
 0x1c3   :  { %v8746_v5 = vld [vmem:[#allocation6 + $0xcf8] sm:$0xff]   ;;  %v123_v7 = vld [vmem:[#allocation3 + $0x188] sm:$0xff]  ;;  %v124_v10 = vld [vmem:[#allocation3 + $0x190] sm:$0xff] }
 0x1c4   :  { %v9191_v8 = vadd.f32 %v7703_v4, %v5504_v63  ;;  %7984 = vmatpush3.bf16.msra.mxu0 %v8709_v12  ;;  %v8740_v63 = vld [vmem:[#allocation6 + $0xc70] sm:$0xff]   ;;  %v8745_v4 = vld [vmem:[#allocation6 + $0xc38] sm:$0xff]   ;;  %v8950_v12 = vpack.c.bf16 %v123_v7, %v123_v7  ;;  %v8783_v7 = vld [vmem:[#allocation6 + $0xe80] sm:$0xff]  }
 0x1c5   :  { %7985 = vmatprep.subr.bf16.mxu0 %v8712_v15  ;;  %8006 = vmatpush3.bf16.msra.mxu1 %v8711_v14  ;;  %v125_v13 = vld [vmem:[#allocation3 + $0x198] sm:$0xff]  ;;  %v8749_v14 = vld [vmem:[#allocation6 + $0xd00] sm:$0xff]  }
 0x1c6   :  { %8007 = vmatprep.subr.bf16.mxu1 %v8714_v17  ;;  %v8750_v15 = vld [vmem:[#allocation6 + $0xdc0] sm:$0xff]   ;;  %v8952_v17 = vpack.c.bf16 %v125_v13, %v125_v13  ;;  %v8789_v13 = vld [vmem:[#allocation6 + $0xe10] sm:$0xff]  }
 0x1c8   :  { %7986 = vmatpush3.bf16.msra.mxu0 %v8713_v16  ;;  %v8951_v16 = vpack.c.bf16 %v124_v10, %v124_v10  ;;  %v8786_v10 = vld [vmem:[#allocation6 + $0xec8] sm:$0xff]  }
 0x1c9   :  { %8008 = vmatpush3.bf16.msra.mxu1 %v8715_v20  ;;  %8015 = vmatprep.subr.bf16.mxu0 %v8716_v21  ;;  %v8753_v20 = vld [vmem:[#allocation6 + $0xd08] sm:$0xff]  }
 0x1ca   :  { %8037 = vmatprep.subr.bf16.mxu1 %v8718_v27  ;;  %v8754_v21 = vld [vmem:[#allocation6 + $0xdc8] sm:$0xff]   ;;  %v8760_v27 = vld [vmem:[#allocation6 + $0xd58] sm:$0xff]  }
 0x1cb   :  { %6062 = vmatmul.mubr.bf16.vlgmr.msra.gmra.mrb[44].mxu0 %v8945_v24  ;;  %v8757_v24 = vld [vmem:[#allocation6 + $0xd10] sm:$0xff]  }
 0x1cc   :  { %8016 = vmatpush3.bf16.msra.mxu0 %v8717_v26  ;;  %6102 = vmatmul.mubr.bf16.vlgmr.msra.gmra.mrb[44].mxu1 %v8947_v28  ;;  %v8759_v26 = vld [vmem:[#allocation6 + $0xd90] sm:$0xff]   ;;  %v8761_v28 = vld [vmem:[#allocation6 + $0xd18] sm:$0xff]  }
 0x1cd   :  { %8017 = vmatprep.subr.bf16.mxu0 %v8720_v31  ;;  %8038 = vmatpush3.bf16.msra.mxu1 %v8719_v30  ;;  %v8763_v31 = vld [vmem:[#allocation6 + $0xd98] sm:$0xff]  }
 0x1ce   :  { %8039 = vmatprep.subr.bf16.mxu1 %v8722_v33  ;;  %6141 = vmatprep.mubr.bf16.mxu0 %v8950_v12  ;;  %v8764_v33 = vld [vmem:[#allocation6 + $0xd60] sm:$0xff]   ;;  %v8788_v12 = vld [vmem:[#allocation6 + $0xe50] sm:$0xff]  }
 0x1cf   :  { %6181 = vmatprep.mubr.bf16.mxu1 %v8952_v17  ;;  %v8793_v17 = vld [vmem:[#allocation6 + $0xe18] sm:$0xff]  }
 0x1d0   :  { %8018 = vmatpush3.bf16.msra.mxu0 %v8721_v32 }
 0x1d1   :  { %8019 = vmatprep.subr.bf16.mxu0 %v8724_v35  ;;  %8040 = vmatpush3.bf16.msra.mxu1 %v8723_v34 }
 0x1d2   :  { %8041 = vmatprep.subr.bf16.mxu1 %v8726_v37 }
 0x1d4   :  { %8020 = vmatpush3.bf16.msra.mxu0 %v8725_v36  ;;  %v8765_v36 = vld [vmem:[#allocation6 + $0xd20] sm:$0xff]  }
 0x1d5   :  { %8021 = vmatprep.subr.bf16.mxu0 %v8728_v39  ;;  %8042 = vmatpush3.bf16.msra.mxu1 %v8727_v38  ;;  %v8766_v38 = vld [vmem:[#allocation6 + $0xde0] sm:$0xff]  }
 0x1d6   :  { %8043 = vmatprep.subr.bf16.mxu1 %v8730_v41  ;;  %v8767_v41 = vld [vmem:[#allocation6 + $0xda0] sm:$0xff]  }
 0x1d8   :  { %8022 = vmatpush3.bf16.msra.mxu0 %v8729_v40 }
 0x1d9   :  { %8023 = vmatprep.subr.bf16.mxu0 %v8732_v44  ;;  %8044 = vmatpush3.bf16.msra.mxu1 %v8731_v42 }
 0x1da   :  { %8045 = vmatprep.subr.bf16.mxu1 %v8734_v49  ;;  %v8770_v49 = vld [vmem:[#allocation6 + $0xde8] sm:$0xff]  }
 0x1dc   :  { %8024 = vmatpush3.bf16.msra.mxu0 %v8733_v46  ;;  %v8769_v46 = vld [vmem:[#allocation6 + $0xd28] sm:$0xff]  }
 0x1dd   :  { %8025 = vmatprep.subr.bf16.mxu0 %v8736_v54  ;;  %8046 = vmatpush3.bf16.msra.mxu1 %v8735_v51  ;;  %v8772_v51 = vld [vmem:[#allocation6 + $0xd70] sm:$0xff]  }
 0x1de   :  { %v7723_v43 = vpop.f32.mrb[20].mxu0  ;;  %8047 = vmatprep.subr.bf16.mxu1 %v8738_v59  ;;  %v8775_v54 = vld [vmem:[#allocation6 + $0xdb0] sm:$0xff]   ;;  %v127_v59 = vld [vmem:[#allocation3 + $0x1a8] sm:$0xff] }
 0x1df   :  { %v7724_v45 = vpop.f32.mrb[21].mxu0  ;;  %v7745_v50 = vpop.f32.mrb[20].mxu1 }
 0x1e0   :  { %v7725_v47 = vadd.f32 %v7724_v45, %v7723_v43  ;;  %v7726_v48 = vpop.f32.mrb[22].mxu0  ;;  %v7746_v55 = vpop.f32.mrb[21].mxu1  ;;  %8026 = vmatpush3.bf16.msra.mxu0 %v8737_v56  ;;  %v8768_v43 = vld [vmem:[#allocation6 + $0xd68] sm:$0xff]   ;;  %v8777_v56 = vld [vmem:[#allocation6 + $0xd38] sm:$0xff]  }
 0x1e1   :  { %v7727_v53 = vpop.f32.mrb[23].mxu0  ;;  %v7747_v57 = vadd.f32 %v7746_v55, %v7745_v50  ;;  %v7748_v58 = vpop.f32.mrb[22].mxu1  ;;  %8027 = vmatprep.subr.bf16.mxu0 %v8740_v63  ;;  %8048 = vmatpush3.bf16.msra.mxu1 %v8739_v62  ;;  %v8771_v50 = vld [vmem:[#allocation6 + $0xda8] sm:$0xff]   ;;  %v8776_v55 = vld [vmem:[#allocation6 + $0xd78] sm:$0xff]   ;;  %v8780_v62 = vld [vmem:[#allocation6 + $0xe40] sm:$0xff]  }
 0x1e2   :  { %v5584_v52 = vadd.f32 %v7725_v47, %v9191_v8  ;;  %v7749_v60 = vpop.f32.mrb[23].mxu1  ;;  %8049 = vmatprep.subr.bf16.mxu1 %v8742_v1  ;;  %v8747_v8 = vld [vmem:[#allocation6 + $0xcb8] sm:$0xff]   ;;  %v8774_v53 = vld [vmem:[#allocation6 + $0xdf0] sm:$0xff]   ;;  %v128_v1 = vld [vmem:[#allocation3 + $0x1b0] sm:$0xff] }
 0x1e3   :  { %v126_v58 = vld [vmem:[#allocation3 + $0x1a0] sm:$0xff] }
 0x1e4   :  { %v9194_v61 = vadd.f32 %v7747_v57, %v5584_v52  ;;  %8028 = vmatpush3.bf16.msra.mxu0 %v8741_v0  ;;  %v8773_v52 = vld [vmem:[#allocation6 + $0xd30] sm:$0xff]   ;;  %v8778_v57 = vld [vmem:[#allocation6 + $0xdf8] sm:$0xff]   ;;  %v8953_v63 = vpack.c.bf16 %v126_v58, %v126_v58  ;;  %v8954_v0 = vpack.c.bf16 %v127_v59, %v127_v59  ;;  %v8815_v59 = vld [vmem:[#allocation6 + $0xf80] sm:$0xff]  }
 0x1e5   :  { %8029 = vmatprep.subr.bf16.mxu0 %v8744_v3  ;;  %8050 = vmatpush3.bf16.msra.mxu1 %v8743_v2  ;;  %v8779_v60 = vld [vmem:[#allocation6 + $0xdb8] sm:$0xff]   ;;  %v129_v2 = vld [vmem:[#allocation3 + $0x1b8] sm:$0xff]  ;;  %v8781_v3 = vld [vmem:[#allocation6 + $0xe00] sm:$0xff]  }
 0x1e6   :  { %8051 = vmatprep.subr.bf16.mxu1 %v8746_v5  ;;  %v8955_v5 = vpack.c.bf16 %v128_v1, %v128_v1  ;;  %v8956_v6 = vpack.c.bf16 %v129_v2, %v129_v2  ;;  %v8821_v1 = vld [vmem:[#allocation6 + $0xf10] sm:$0xff]  }
 0x1e7   :  { %v8822_v2 = vld [vmem:[#allocation6 + $0xfd0] sm:$0xff]  }
 0x1e8   :  { %8030 = vmatpush3.bf16.msra.mxu0 %v8745_v4  ;;  %v8782_v4 = vld [vmem:[#allocation6 + $0xec0] sm:$0xff]  }
 0x1e9   :  { %8052 = vmatpush3.bf16.msra.mxu1 %v8747_v8  ;;  %8059 = vmatprep.subr.bf16.mxu0 %v8748_v9  ;;  %v8784_v8 = vld [vmem:[#allocation6 + $0xe48] sm:$0xff]  }
 0x1ea   :  { %8081 = vmatprep.subr.bf16.mxu1 %v8750_v15  ;;  %v8785_v9 = vld [vmem:[#allocation6 + $0xe08] sm:$0xff]   ;;  %v8791_v15 = vld [vmem:[#allocation6 + $0xe90] sm:$0xff]  }
 0x1eb   :  { %6142 = vmatmul.mubr.bf16.vlgmr.msra.gmra.mrb[48].mxu0 %v8949_v11  ;;  %v8787_v11 = vld [vmem:[#allocation6 + $0xe88] sm:$0xff]  }
 0x1ec   :  { %8060 = vmatpush3.bf16.msra.mxu0 %v8749_v14  ;;  %6182 = vmatmul.mubr.bf16.vlgmr.msra.gmra.mrb[48].mxu1 %v8951_v16  ;;  %v8790_v14 = vld [vmem:[#allocation6 + $0xed0] sm:$0xff]   ;;  %v8792_v16 = vld [vmem:[#allocation6 + $0xe58] sm:$0xff]  }
 0x1ed   :  { %8061 = vmatprep.subr.bf16.mxu0 %v8752_v19  ;;  %8082 = vmatpush3.bf16.msra.mxu1 %v8751_v18  ;;  %v8794_v18 = vld [vmem:[#allocation6 + $0xed8] sm:$0xff]  }
 0x1ee   :  { %8083 = vmatprep.subr.bf16.mxu1 %v8754_v21  ;;  %6221 = vmatprep.mubr.bf16.mxu0 %v8954_v0  ;;  %v8820_v0 = vld [vmem:[#allocation6 + $0xf50] sm:$0xff]  }
 0x1ef   :  { %6261 = vmatprep.mubr.bf16.mxu1 %v8956_v6  ;;  %v8826_v6 = vld [vmem:[#allocation6 + $0xfd8] sm:$0xff]  }
 0x1f0   :  { %8062 = vmatpush3.bf16.msra.mxu0 %v8753_v20  ;;  %v8795_v20 = vld [vmem:[#allocation6 + $0xe98] sm:$0xff]  }
 0x1f1   :  { %8063 = vmatprep.subr.bf16.mxu0 %v8756_v23  ;;  %8084 = vmatpush3.bf16.msra.mxu1 %v8755_v22  ;;  %v8796_v22 = vld [vmem:[#allocation6 + $0xe60] sm:$0xff]  }
 0x1f2   :  { %8085 = vmatprep.subr.bf16.mxu1 %v8758_v25  ;;  %v8797_v25 = vld [vmem:[#allocation6 + $0xe20] sm:$0xff]  }
 0x1f4   :  { %8064 = vmatpush3.bf16.msra.mxu0 %v8757_v24 }
 0x1f5   :  { %8065 = vmatprep.subr.bf16.mxu0 %v8760_v27  ;;  %8086 = vmatpush3.bf16.msra.mxu1 %v8759_v26  ;;  %v8798_v27 = vld [vmem:[#allocation6 + $0xee0] sm:$0xff]  }
 0x1f6   :  { %8087 = vmatprep.subr.bf16.mxu1 %v8762_v29 }
 0x1f8   :  { %8066 = vmatpush3.bf16.msra.mxu0 %v8761_v28 }
 0x1f9   :  { %8067 = vmatprep.subr.bf16.mxu0 %v8764_v33  ;;  %8088 = vmatpush3.bf16.msra.mxu1 %v8763_v31 }
 0x1fa   :  { %8089 = vmatprep.subr.bf16.mxu1 %v8766_v38  ;;  %v8802_v38 = vld [vmem:[#allocation6 + $0xee8] sm:$0xff]  }
 0x1fc   :  { %8068 = vmatpush3.bf16.msra.mxu0 %v8765_v36 }
 0x1fd   :  { %8069 = vmatprep.subr.bf16.mxu0 %v8768_v43  ;;  %8090 = vmatpush3.bf16.msra.mxu1 %v8767_v41  ;;  %v8805_v41 = vld [vmem:[#allocation6 + $0xe30] sm:$0xff]  }
 0x1fe   :  { %v7767_v30 = vpop.f32.mrb[24].mxu0  ;;  %8091 = vmatprep.subr.bf16.mxu1 %v8770_v49  ;;  %v8807_v43 = vld [vmem:[#allocation6 + $0xeb0] sm:$0xff]   ;;  %v8811_v49 = vld [vmem:[#allocation6 + $0xeb8] sm:$0xff]  }
 0x1ff   :  { %v7768_v32 = vpop.f32.mrb[25].mxu0  ;;  %v7789_v37 = vpop.f32.mrb[24].mxu1 }
 0x200   :  { %v7769_v34 = vadd.f32 %v7768_v32, %v7767_v30  ;;  %v7770_v35 = vpop.f32.mrb[26].mxu0  ;;  %v7790_v42 = vpop.f32.mrb[25].mxu1  ;;  %8070 = vmatpush3.bf16.msra.mxu0 %v8769_v46  ;;  %v8799_v30 = vld [vmem:[#allocation6 + $0xea0] sm:$0xff]   ;;  %v8800_v32 = vld [vmem:[#allocation6 + $0xe68] sm:$0xff]   ;;  %v8810_v46 = vld [vmem:[#allocation6 + $0xef8] sm:$0xff]  }
 0x201   :  { %v7771_v40 = vpop.f32.mrb[27].mxu0  ;;  %v7791_v44 = vadd.f32 %v7790_v42, %v7789_v37  ;;  %v7792_v45 = vpop.f32.mrb[26].mxu1  ;;  %8071 = vmatprep.subr.bf16.mxu0 %v8772_v51  ;;  %8092 = vmatpush3.bf16.msra.mxu1 %v8771_v50  ;;  %v8801_v35 = vld [vmem:[#allocation6 + $0xe28] sm:$0xff]   ;;  %v8806_v42 = vld [vmem:[#allocation6 + $0xef0] sm:$0xff]   ;;  %v8812_v50 = vld [vmem:[#allocation6 + $0xf40] sm:$0xff]  }
 0x202   :  { %v5664_v39 = vadd.f32 %v7769_v34, %v9194_v61  ;;  %v7793_v47 = vpop.f32.mrb[27].mxu1  ;;  %8093 = vmatprep.subr.bf16.mxu1 %v8774_v53  ;;  %v9093_v61 = vmov 0   ;;  %v8804_v40 = vld [vmem:[#allocation6 + $0xe70] sm:$0xff]   ;;  %v8809_v45 = vld [vmem:[#allocation6 + $0xe38] sm:$0xff]   ;;  %v132_v51 = vld [vmem:[#allocation3 + $0x1d0] sm:$0xff] }
 0x203   :  { %73 = vst.msk [vmem:[#allocation2 + $0x110] sm:$0xf] %vm72_vm0, %v9093_v61  ;;  %v130_v47 = vld [vmem:[#allocation3 + $0x1c0] sm:$0xff]  ;;  %v8817_v61 = vld [vmem:[#allocation6 + $0xf08] sm:$0xff]  }
 0x204   :  { %v9197_v48 = vadd.f32 %v7791_v44, %v5664_v39  ;;  %8072 = vmatpush3.bf16.msra.mxu0 %v8773_v52  ;;  %v8803_v39 = vld [vmem:[#allocation6 + $0xea8] sm:$0xff]   ;;  %v8808_v44 = vld [vmem:[#allocation6 + $0xe78] sm:$0xff]   ;;  %v133_v52 = vld [vmem:[#allocation3 + $0x1d8] sm:$0xff]  ;;  %v8957_v53 = vpack.c.bf16 %v130_v47, %v130_v47 }
 0x205   :  { %8073 = vmatprep.subr.bf16.mxu0 %v8776_v55  ;;  %8094 = vmatpush3.bf16.msra.mxu1 %v8775_v54  ;;  %v8813_v55 = vld [vmem:[#allocation6 + $0xf00] sm:$0xff]   ;;  %v8960_v58 = vpack.c.bf16 %v133_v52, %v133_v52  ;;  %v8852_v52 = vld [vmem:[#allocation6 + $0x1050] sm:$0xff]  }
 0x206   :  { %8095 = vmatprep.subr.bf16.mxu1 %v8778_v57  ;;  %v8959_v57 = vpack.c.bf16 %v132_v51, %v132_v51  ;;  %v8847_v47 = vld [vmem:[#allocation6 + $0x1080] sm:$0xff]   ;;  %v8851_v51 = vld [vmem:[#allocation6 + $0x1088] sm:$0xff]  }
 0x208   :  { %8074 = vmatpush3.bf16.msra.mxu0 %v8777_v56  ;;  %v8814_v56 = vld [vmem:[#allocation6 + $0xfc0] sm:$0xff]  }
 0x209   :  { %8103 = vmatprep.subr.bf16.mxu0 %v8780_v62  ;;  %8096 = vmatpush3.bf16.msra.mxu1 %v8779_v60  ;;  %v8816_v60 = vld [vmem:[#allocation6 + $0xf48] sm:$0xff]  }
 0x20a   :  { %8125 = vmatprep.subr.bf16.mxu1 %v8782_v4  ;;  %v8818_v62 = vld [vmem:[#allocation6 + $0xfc8] sm:$0xff]   ;;  %v8824_v4 = vld [vmem:[#allocation6 + $0xf58] sm:$0xff]  }
 0x20b   :  { %6222 = vmatmul.mubr.bf16.vlgmr.msra.gmra.mrb[52].mxu0 %v8953_v63  ;;  %v8819_v63 = vld [vmem:[#allocation6 + $0xf88] sm:$0xff]  }
 0x20c   :  { %8104 = vmatpush3.bf16.msra.mxu0 %v8781_v3  ;;  %6262 = vmatmul.mubr.bf16.vlgmr.msra.gmra.mrb[52].mxu1 %v8955_v5  ;;  %v8823_v3 = vld [vmem:[#allocation6 + $0xf90] sm:$0xff]   ;;  %v8825_v5 = vld [vmem:[#allocation6 + $0xf18] sm:$0xff]  }
 0x20d   :  { %8105 = vmatprep.subr.bf16.mxu0 %v8784_v8  ;;  %8126 = vmatpush3.bf16.msra.mxu1 %v8783_v7  ;;  %v8827_v7 = vld [vmem:[#allocation6 + $0xf98] sm:$0xff]  }
 0x20e   :  { %8127 = vmatprep.subr.bf16.mxu1 %v8786_v10  ;;  %6341 = vmatprep.mubr.bf16.mxu1 %v8960_v58  ;;  %v8858_v58 = vld [vmem:[#allocation6 + $0x10d8] sm:$0xff]  }
 0x210   :  { %8106 = vmatpush3.bf16.msra.mxu0 %v8785_v9  ;;  %v8828_v9 = vld [vmem:[#allocation6 + $0xf60] sm:$0xff]  }
 0x211   :  { %8107 = vmatprep.subr.bf16.mxu0 %v8788_v12  ;;  %8128 = vmatpush3.bf16.msra.mxu1 %v8787_v11  ;;  %v8829_v11 = vld [vmem:[#allocation6 + $0xf20] sm:$0xff]  }
 0x212   :  { %8129 = vmatprep.subr.bf16.mxu1 %v8790_v14  ;;  %v8830_v14 = vld [vmem:[#allocation6 + $0xfe0] sm:$0xff]  }
 0x214   :  { %8108 = vmatpush3.bf16.msra.mxu0 %v8789_v13 }
 0x215   :  { %8109 = vmatprep.subr.bf16.mxu0 %v8792_v16  ;;  %8130 = vmatpush3.bf16.msra.mxu1 %v8791_v15  ;;  %v8831_v16 = vld [vmem:[#allocation6 + $0xfa0] sm:$0xff]  }
 0x216   :  { %8131 = vmatprep.subr.bf16.mxu1 %v8794_v18 }
 0x218   :  { %8110 = vmatpush3.bf16.msra.mxu0 %v8793_v17 }
 0x219   :  { %8111 = vmatprep.subr.bf16.mxu0 %v8796_v22  ;;  %8132 = vmatpush3.bf16.msra.mxu1 %v8795_v20 }
 0x21a   :  { %8133 = vmatprep.subr.bf16.mxu1 %v8798_v27  ;;  %v8835_v27 = vld [vmem:[#allocation6 + $0xfa8] sm:$0xff]  }
 0x21c   :  { %8112 = vmatpush3.bf16.msra.mxu0 %v8797_v25 }
 0x21d   :  { %8113 = vmatprep.subr.bf16.mxu0 %v8800_v32  ;;  %8134 = vmatpush3.bf16.msra.mxu1 %v8799_v30  ;;  %v8838_v30 = vld [vmem:[#allocation6 + $0xff0] sm:$0xff]   ;;  %v8840_v32 = vld [vmem:[#allocation6 + $0xf78] sm:$0xff]  }
 0x21e   :  { %v7811_v19 = vpop.f32.mrb[28].mxu0  ;;  %8135 = vmatprep.subr.bf16.mxu1 %v8802_v38  ;;  %v8844_v38 = vld [vmem:[#allocation6 + $0x1040] sm:$0xff]  }
 0x21f   :  { %v7812_v21 = vpop.f32.mrb[29].mxu0  ;;  %v7833_v26 = vpop.f32.mrb[28].mxu1 }
 0x220   :  { %v7813_v23 = vadd.f32 %v7812_v21, %v7811_v19  ;;  %v7814_v24 = vpop.f32.mrb[30].mxu0  ;;  %v7834_v31 = vpop.f32.mrb[29].mxu1  ;;  %8114 = vmatpush3.bf16.msra.mxu0 %v8801_v35  ;;  %v8832_v19 = vld [vmem:[#allocation6 + $0xf68] sm:$0xff]   ;;  %v134_v35 = vld [vmem:[#allocation3 + $0x1e0] sm:$0xff] }
 0x221   :  { %v7815_v29 = vpop.f32.mrb[31].mxu0  ;;  %v7835_v33 = vadd.f32 %v7834_v31, %v7833_v26  ;;  %v7836_v34 = vpop.f32.mrb[30].mxu1  ;;  %8115 = vmatprep.subr.bf16.mxu0 %v8804_v40  ;;  %8136 = vmatpush3.bf16.msra.mxu1 %v8803_v39  ;;  %v8833_v21 = vld [vmem:[#allocation6 + $0xf28] sm:$0xff]   ;;  %v8839_v31 = vld [vmem:[#allocation6 + $0xfb0] sm:$0xff]   ;;  %v8961_v40 = vpack.c.bf16 %v134_v35, %v134_v35 }
 0x222   :  { %v5744_v28 = vadd.f32 %v7813_v23, %v9197_v48  ;;  %v7837_v36 = vpop.f32.mrb[31].mxu1  ;;  %8137 = vmatprep.subr.bf16.mxu1 %v8806_v42  ;;  %v131_v48 = vld [vmem:[#allocation3 + $0x1c8] sm:$0xff]  ;;  %v8834_v24 = vld [vmem:[#allocation6 + $0xfe8] sm:$0xff]   ;;  %v8837_v29 = vld [vmem:[#allocation6 + $0xf30] sm:$0xff]  }
 0x223   :  { %v8958_v54 = vpack.c.bf16 %v131_v48, %v131_v48  ;;  %v8842_v34 = vld [vmem:[#allocation6 + $0xff8] sm:$0xff]   ;;  %v135_v36 = vld [vmem:[#allocation3 + $0x1e8] sm:$0xff]  ;;  %v136_v39 = vld [vmem:[#allocation3 + $0x1f0] sm:$0xff] }
 0x224   :  { %v9200_v37 = vadd.f32 %v7835_v33, %v5744_v28  ;;  %8116 = vmatpush3.bf16.msra.mxu0 %v8805_v41  ;;  %v8836_v28 = vld [vmem:[#allocation6 + $0xf70] sm:$0xff]   ;;  %v8841_v33 = vld [vmem:[#allocation6 + $0xf38] sm:$0xff]   ;;  %v8962_v41 = vpack.c.bf16 %v135_v36, %v135_v36  ;;  %v8848_v48 = vld [vmem:[#allocation6 + $0x1048] sm:$0xff]  }
 0x225   :  { %8117 = vmatprep.subr.bf16.mxu0 %v8808_v44  ;;  %8138 = vmatpush3.bf16.msra.mxu1 %v8807_v43  ;;  %v137_v42 = vld [vmem:[#allocation3 + $0x1f8] sm:$0xff]  ;;  %v8845_v43 = vld [vmem:[#allocation6 + $0x1000] sm:$0xff]   ;;  %v142_v36 = vld [vmem:[#allocation3 + $0x220] sm:$0xff] }
 0x226   :  { %8139 = vmatprep.subr.bf16.mxu1 %v8810_v46  ;;  %6301 = vmatprep.mubr.bf16.mxu0 %v8958_v54  ;;  %v8846_v44 = vld [vmem:[#allocation6 + $0x10c0] sm:$0xff]   ;;  %v8964_v46 = vpack.c.bf16 %v137_v42, %v137_v42  ;;  %v8854_v54 = vld [vmem:[#allocation6 + $0x10d0] sm:$0xff]  }
 0x227   :  { %v8878_v35 = vld [vmem:[#allocation6 + $0x1110] sm:$0xff]  }
 0x228   :  { %8118 = vmatpush3.bf16.msra.mxu0 %v8809_v45  ;;  %v8963_v45 = vpack.c.bf16 %v136_v39, %v136_v39 }
 0x229   :  { %8140 = vmatpush3.bf16.msra.mxu1 %v8811_v49  ;;  %8147 = vmatprep.subr.bf16.mxu0 %v8812_v50  ;;  %v8849_v49 = vld [vmem:[#allocation6 + $0x1008] sm:$0xff]  }
 0x22a   :  { %8169 = vmatprep.subr.bf16.mxu1 %v8814_v56  ;;  %v8850_v50 = vld [vmem:[#allocation6 + $0x10c8] sm:$0xff]   ;;  %v8856_v56 = vld [vmem:[#allocation6 + $0x1058] sm:$0xff]  }
 0x22b   :  { %6302 = vmatmul.mubr.bf16.vlgmr.msra.gmra.mrb[56].mxu0 %v8957_v53  ;;  %v8853_v53 = vld [vmem:[#allocation6 + $0x1010] sm:$0xff]  }
 0x22c   :  { %8148 = vmatpush3.bf16.msra.mxu0 %v8813_v55  ;;  %6342 = vmatmul.mubr.bf16.vlgmr.msra.gmra.mrb[56].mxu1 %v8959_v57  ;;  %v8855_v55 = vld [vmem:[#allocation6 + $0x1090] sm:$0xff]   ;;  %v8857_v57 = vld [vmem:[#allocation6 + $0x1018] sm:$0xff]  }
 0x22d   :  { %8149 = vmatprep.subr.bf16.mxu0 %v8816_v60  ;;  %8170 = vmatpush3.bf16.msra.mxu1 %v8815_v59  ;;  %v8859_v60 = vld [vmem:[#allocation6 + $0x1098] sm:$0xff]  }
 0x22e   :  { %8171 = vmatprep.subr.bf16.mxu1 %v8818_v62  ;;  %6381 = vmatprep.mubr.bf16.mxu0 %v8962_v41  ;;  %v8860_v62 = vld [vmem:[#allocation6 + $0x1060] sm:$0xff]  }
 0x22f   :  { %6421 = vmatprep.mubr.bf16.mxu1 %v8964_v46  ;;  %v8880_v41 = vld [vmem:[#allocation6 + $0x1120] sm:$0xff]  }
 0x230   :  { %8150 = vmatpush3.bf16.msra.mxu0 %v8817_v61 }
 0x231   :  { %8151 = vmatprep.subr.bf16.mxu0 %v8820_v0  ;;  %8172 = vmatpush3.bf16.msra.mxu1 %v8819_v63 }
 0x232   :  { %8173 = vmatprep.subr.bf16.mxu1 %v8822_v2 }
 0x234   :  { %8152 = vmatpush3.bf16.msra.mxu0 %v8821_v1  ;;  %v8861_v1 = vld [vmem:[#allocation6 + $0x1020] sm:$0xff]  }
 0x235   :  { %8153 = vmatprep.subr.bf16.mxu0 %v8824_v4  ;;  %8174 = vmatpush3.bf16.msra.mxu1 %v8823_v3  ;;  %v8862_v3 = vld [vmem:[#allocation6 + $0x10e0] sm:$0xff]  }
 0x236   :  { %8175 = vmatprep.subr.bf16.mxu1 %v8826_v6  ;;  %v8863_v6 = vld [vmem:[#allocation6 + $0x10a0] sm:$0xff]  }
 0x238   :  { %8154 = vmatpush3.bf16.msra.mxu0 %v8825_v5 }
 0x239   :  { %8155 = vmatprep.subr.bf16.mxu0 %v8828_v9  ;;  %8176 = vmatpush3.bf16.msra.mxu1 %v8827_v7 }
 0x23a   :  { %8177 = vmatprep.subr.bf16.mxu1 %v8830_v14  ;;  %v8866_v14 = vld [vmem:[#allocation6 + $0x10e8] sm:$0xff]  }
 0x23c   :  { %8156 = vmatpush3.bf16.msra.mxu0 %v8829_v11  ;;  %v8865_v11 = vld [vmem:[#allocation6 + $0x1028] sm:$0xff]  }
 0x23d   :  { %8157 = vmatprep.subr.bf16.mxu0 %v8832_v19  ;;  %8178 = vmatpush3.bf16.msra.mxu1 %v8831_v16  ;;  %v8868_v16 = vld [vmem:[#allocation6 + $0x1070] sm:$0xff]  }
 0x23e   :  { %v7855_v8 = vpop.f32.mrb[32].mxu0  ;;  %8179 = vmatprep.subr.bf16.mxu1 %v8834_v24  ;;  %v8871_v19 = vld [vmem:[#allocation6 + $0x10b0] sm:$0xff]   ;;  %v139_v24 = vld [vmem:[#allocation3 + $0x208] sm:$0xff] }
 0x23f   :  { %v7856_v10 = vpop.f32.mrb[33].mxu0  ;;  %v7877_v15 = vpop.f32.mrb[32].mxu1 }
 0x240   :  { %v7857_v12 = vadd.f32 %v7856_v10, %v7855_v8  ;;  %v7858_v13 = vpop.f32.mrb[34].mxu0  ;;  %v7878_v20 = vpop.f32.mrb[33].mxu1  ;;  %8158 = vmatpush3.bf16.msra.mxu0 %v8833_v21  ;;  %v8864_v8 = vld [vmem:[#allocation6 + $0x1068] sm:$0xff]   ;;  %v8873_v21 = vld [vmem:[#allocation6 + $0x1038] sm:$0xff]  }
 0x241   :  { %v7859_v18 = vpop.f32.mrb[35].mxu0  ;;  %v7879_v22 = vadd.f32 %v7878_v20, %v7877_v15  ;;  %v7880_v23 = vpop.f32.mrb[34].mxu1  ;;  %8159 = vmatprep.subr.bf16.mxu0 %v8836_v28  ;;  %8180 = vmatpush3.bf16.msra.mxu1 %v8835_v27  ;;  %v8867_v15 = vld [vmem:[#allocation6 + $0x10a8] sm:$0xff]   ;;  %v8872_v20 = vld [vmem:[#allocation6 + $0x1078] sm:$0xff]   ;;  %v141_v27 = vld [vmem:[#allocation3 + $0x218] sm:$0xff] }
 0x242   :  { %v5824_v17 = vadd.f32 %v7857_v12, %v9200_v37  ;;  %v7881_v25 = vpop.f32.mrb[35].mxu1  ;;  %8181 = vmatprep.subr.bf16.mxu1 %v8838_v30  ;;  %v8843_v37 = vld [vmem:[#allocation6 + $0xfb8] sm:$0xff]   ;;  %v8870_v18 = vld [vmem:[#allocation6 + $0x10f0] sm:$0xff]   ;;  %v9094_v30 = vmov 0.0  }
 0x243   :  { %v138_v23 = vld [vmem:[#allocation3 + $0x200] sm:$0xff] }
 0x244   :  { %v9203_v26 = vadd.f32 %v7879_v22, %v5824_v17  ;;  %8160 = vmatpush3.bf16.msra.mxu0 %v8837_v29  ;;  %v8869_v17 = vld [vmem:[#allocation6 + $0x1030] sm:$0xff]   ;;  %v8874_v22 = vld [vmem:[#allocation6 + $0x10f8] sm:$0xff]   ;;  %v8965_v28 = vpack.c.bf16 %v138_v23, %v138_v23  ;;  %v8966_v29 = vpack.c.bf16 %v139_v24, %v139_v24 }
 0x245   :  { %8161 = vmatprep.subr.bf16.mxu0 %v8840_v32  ;;  %8182 = vmatpush3.bf16.msra.mxu1 %v8839_v31  ;;  %v8875_v25 = vld [vmem:[#allocation6 + $0x10b8] sm:$0xff]   ;;  %v8876_v31 = vld [vmem:[#allocation6 + $0x1100] sm:$0xff]  }
 0x246   :  { %8183 = vmatprep.subr.bf16.mxu1 %v8842_v34  ;;  %v8877_v34 = vld [vmem:[#allocation6 + $0x1108] sm:$0xff]  }
 0x248   :  { %8162 = vmatpush3.bf16.msra.mxu0 %v8841_v33  ;;  %v8968_v33 = vpack.c.bf16 %v141_v27, %v141_v27 }
 0x249   :  { %8184 = vmatpush3.bf16.msra.mxu1 %v8843_v37  ;;  %8191 = vmatprep.subr.bf16.mxu0 %v8844_v38  ;;  %v7486_v37 = vpack.c.bf16 %v142_v36, %v142_v36  ;;  %v8879_v38 = vld [vmem:[#allocation6 + $0x1118] sm:$0xff]  }
 0x24a   :  { %8213 = vmatprep.subr.bf16.mxu1 %v8846_v44 }
 0x24b   :  { %6382 = vmatmul.mubr.bf16.vlgmr.msra.gmra.mrb[60].mxu0 %v8961_v40  ;;  %455 = vst.msk [vmem:[#allocation2 + $0x110] sm:$0xf] %vm454_vm2, %v7486_v37  ;;  %v8893_v37 = vld [vmem:[#allocation9] sm:$0xff]  }
 0x24c   :  { %8192 = vmatpush3.bf16.msra.mxu0 %v8845_v43  ;;  %6422 = vmatmul.mubr.bf16.vlgmr.msra.gmra.mrb[60].mxu1 %v8963_v45 }
 0x24d   :  { %8193 = vmatprep.subr.bf16.mxu0 %v8848_v48  ;;  %8214 = vmatpush3.bf16.msra.mxu1 %v8847_v47 }
 0x24e   :  { %8215 = vmatprep.subr.bf16.mxu1 %v8850_v50  ;;  %6461 = vmatprep.mubr.bf16.mxu0 %v8966_v29  ;;  %v8881_v50 = vld [vmem:[#allocation6 + $0x1128] sm:$0xff]  }
 0x24f   :  { %6501 = vmatprep.mubr.bf16.mxu1 %v8968_v33 }
 0x250   :  { %8194 = vmatpush3.bf16.msra.mxu0 %v8849_v49 }
 0x251   :  { %8195 = vmatprep.subr.bf16.mxu0 %v8852_v52  ;;  %8216 = vmatpush3.bf16.msra.mxu1 %v8851_v51 }
 0x252   :  { %8217 = vmatprep.subr.bf16.mxu1 %v8854_v54  ;;  %v8883_v54 = vld [vmem:[#allocation6 + $0x1138] sm:$0xff]  }
 0x254   :  { %8196 = vmatpush3.bf16.msra.mxu0 %v8853_v53  ;;  %v8882_v53 = vld [vmem:[#allocation6 + $0x1130] sm:$0xff]  }
 0x255   :  { %8197 = vmatprep.subr.bf16.mxu0 %v8856_v56  ;;  %8218 = vmatpush3.bf16.msra.mxu1 %v8855_v55  ;;  %v8884_v55 = vld [vmem:[#allocation2 + $0x110] ss:$0 sps:$4 sm:$0xff]  }
 0x256   :  { %8219 = vmatprep.subr.bf16.mxu1 %v8858_v58 }
 0x258   :  { %8198 = vmatpush3.bf16.msra.mxu0 %v8857_v57 }
 0x259   :  { %8199 = vmatprep.subr.bf16.mxu0 %v8860_v62  ;;  %8220 = vmatpush3.bf16.msra.mxu1 %v8859_v60 }
 0x25a   :  { %8221 = vmatprep.subr.bf16.mxu1 %v8862_v3 }
 0x25c   :  { %8200 = vmatpush3.bf16.msra.mxu0 %v8861_v1 }
 0x25d   :  { %8201 = vmatprep.subr.bf16.mxu0 %v8864_v8  ;;  %8222 = vmatpush3.bf16.msra.mxu1 %v8863_v6 }
 0x25e   :  { %v7899_v59 = vpop.f32.mrb[36].mxu0  ;;  %8223 = vmatprep.subr.bf16.mxu1 %v8866_v14 }
 0x25f   :  { %v7900_v61 = vpop.f32.mrb[37].mxu0  ;;  %v7921_v2 = vpop.f32.mrb[36].mxu1 }
 0x260   :  { %v7901_v63 = vadd.f32 %v7900_v61, %v7899_v59  ;;  %v7902_v0 = vpop.f32.mrb[38].mxu0  ;;  %v7922_v7 = vpop.f32.mrb[37].mxu1  ;;  %8202 = vmatpush3.bf16.msra.mxu0 %v8865_v11 }
 0x261   :  { %v7903_v5 = vpop.f32.mrb[39].mxu0  ;;  %v7923_v9 = vadd.f32 %v7922_v7, %v7921_v2  ;;  %v7924_v10 = vpop.f32.mrb[38].mxu1  ;;  %8203 = vmatprep.subr.bf16.mxu0 %v8868_v16  ;;  %8224 = vmatpush3.bf16.msra.mxu1 %v8867_v15  ;;  %v8885_v16 = vld [vmem:[#allocation8] sm:$0xff]  }
 0x262   :  { %v5904_v4 = vadd.f32 %v7901_v63, %v9203_v26  ;;  %v7925_v12 = vpop.f32.mrb[39].mxu1  ;;  %8225 = vmatprep.subr.bf16.mxu1 %v8870_v18  ;;  %v140_v26 = vld [vmem:[#allocation3 + $0x210] sm:$0xff]  ;;  %v8887_v18 = vld [vmem:[#allocation8 + $0x10] sm:$0xff]  }
 0x263   :  { %v8967_v32 = vpack.c.bf16 %v140_v26, %v140_v26  ;;  %v8891_v26 = vld [vmem:[#allocation8 + $0x30] sm:$0xff]  }
 0x264   :  { %v9206_v13 = vadd.f32 %v7923_v9, %v5904_v4  ;;  %8204 = vmatpush3.bf16.msra.mxu0 %v8869_v17  ;;  %v8886_v17 = vld [vmem:[#allocation8 + $0x8] sm:$0xff]  }
 0x265   :  { %8205 = vmatprep.subr.bf16.mxu0 %v8872_v20  ;;  %8226 = vmatpush3.bf16.msra.mxu1 %v8871_v19  ;;  %v8888_v19 = vld [vmem:[#allocation8 + $0x18] sm:$0xff]   ;;  %v8889_v20 = vld [vmem:[#allocation8 + $0x20] sm:$0xff]  }
 0x266   :  { %8227 = vmatprep.subr.bf16.mxu1 %v8874_v22 }
 0x268   :  { %8206 = vmatpush3.bf16.msra.mxu0 %v8873_v21  ;;  %v8890_v21 = vld [vmem:[#allocation8 + $0x28] sm:$0xff]  }
 0x269   :  { %8262 = vmatprep.subr.bf16.mxu0 %v9094_v30  ;;  %8228 = vmatpush3.bf16.msra.mxu1 %v8875_v25 }
 0x26a   :  { %8282 = vmatprep.subr.bf16.mxu1 %v9094_v30 }
 0x26b   :  { %6462 = vmatmul.mubr.bf16.vlgmr.msra.gmra.mrb[64].mxu0 %v8965_v28 }
 0x26c   :  { %8263 = vmatpush3.bf16.msra.mxu0 %v8876_v31  ;;  %6502 = vmatmul.mubr.bf16.vlgmr.msra.gmra.mrb[64].mxu1 %v8967_v32 }
 0x26d   :  { %8264 = vmatprep.subr.bf16.mxu0 %v9094_v30  ;;  %8278 = vmatprep.mubr.msk.bf16.mxu0 %vm9095_vm1, %v9094_v30 }
 0x26e   :  { %8298 = vmatprep.mubr.msk.bf16.mxu1 %vm9095_vm1, %v9094_v30  ;;  %8283 = vmatpush3.bf16.msra.mxu1 %v8885_v16 }
 0x26f   :  { %8284 = vmatprep.subr.bf16.mxu1 %v9094_v30 }
 0x270   :  { %8265 = vmatpush3.bf16.msra.mxu0 %v8877_v34 }
 0x271   :  { %8266 = vmatprep.subr.bf16.mxu0 %v9094_v30 }
 0x272   :  { %8285 = vmatpush3.bf16.msra.mxu1 %v8886_v17 }
 0x273   :  { %8286 = vmatprep.subr.bf16.mxu1 %v9094_v30 }
 0x274   :  { %8267 = vmatpush3.bf16.msra.mxu0 %v8878_v35  ;;  %v8892_v35 = vld [vmem:[#allocation8 + $0x38] sm:$0xff]  }
 0x275   :  { %8268 = vmatprep.subr.bf16.mxu0 %v9094_v30 }
 0x276   :  { %8287 = vmatpush3.bf16.msra.mxu1 %v8887_v18 }
 0x277   :  { %8288 = vmatprep.subr.bf16.mxu1 %v9094_v30 }
 0x278   :  { %8269 = vmatpush3.bf16.msra.mxu0 %v8879_v38  ;;  %v8894_v38 = vld [vmem:[#allocation9 + $0x8] sm:$0xff]  }
 0x279   :  { %8270 = vmatprep.subr.bf16.mxu0 %v9094_v30 }
 0x27a   :  { %8289 = vmatpush3.bf16.msra.mxu1 %v8888_v19 }
 0x27b   :  { %8290 = vmatprep.subr.bf16.mxu1 %v9094_v30 }
 0x27c   :  { %8271 = vmatpush3.bf16.msra.mxu0 %v8880_v41  ;;  %v8897_v41 = vld [vmem:[#allocation9 + $0x20] sm:$0xff]  }
 0x27d   :  { %8272 = vmatprep.subr.bf16.mxu0 %v9094_v30 }
 0x27e   :  { %v7943_v39 = vpop.f32.mrb[40].mxu0  ;;  %8291 = vmatpush3.bf16.msra.mxu1 %v8889_v20 }
 0x27f   :  { %v7944_v40 = vpop.f32.mrb[41].mxu0  ;;  %v7965_v44 = vpop.f32.mrb[40].mxu1  ;;  %8292 = vmatprep.subr.bf16.mxu1 %v9094_v30 }
 0x280   :  { %v7945_v42 = vadd.f32 %v7944_v40, %v7943_v39  ;;  %v7946_v43 = vpop.f32.mrb[42].mxu0  ;;  %v7966_v47 = vpop.f32.mrb[41].mxu1  ;;  %8273 = vmatpush3.bf16.msra.mxu0 %v8881_v50  ;;  %v8895_v39 = vld [vmem:[#allocation9 + $0x10] sm:$0xff]   ;;  %v8896_v40 = vld [vmem:[#allocation9 + $0x18] sm:$0xff]  }
 0x281   :  { %v7947_v45 = vpop.f32.mrb[43].mxu0  ;;  %v7967_v48 = vadd.f32 %v7966_v47, %v7965_v44  ;;  %v7968_v49 = vpop.f32.mrb[42].mxu1  ;;  %8274 = vmatprep.subr.bf16.mxu0 %v9094_v30 }
 0x282   :  { %v5984_v46 = vadd.f32 %v7945_v42, %v9206_v13  ;;  %v7969_v51 = vpop.f32.mrb[43].mxu1  ;;  %8293 = vmatpush3.bf16.msra.mxu1 %v8890_v21  ;;  %v8898_v42 = vld [vmem:[#allocation9 + $0x28] sm:$0xff]  }
 0x283   :  { %8294 = vmatprep.subr.bf16.mxu1 %v9094_v30 }
 0x284   :  { %v6024_v52 = vadd.f32 %v7967_v48, %v5984_v46  ;;  %8275 = vmatpush3.bf16.msra.mxu0 %v8882_v53 }
 0x285   :  { %8276 = vmatprep.subr.bf16.mxu0 %v9094_v30 }
 0x286   :  { %8295 = vmatpush3.bf16.msra.mxu1 %v8891_v26 }
 0x287   :  { %8296 = vmatprep.subr.bf16.mxu1 %v9094_v30 }
 0x288   :  { %8277 = vmatpush3.bf16.msra.mxu0 %v8883_v54 }
 0x289   :  { %8302 = vmatprep.subr.bf16.mxu0 %v9094_v30 }
 0x28a   :  { %8297 = vmatpush3.bf16.msra.mxu1 %v8892_v35 }
 0x28b   :  { %8279 = vmatmul.mubr.bf16.vlgmr.msra.gmra.mrb[68].mxu0 %v8884_v55 }
 0x28c   :  { %8318 = vmatprep.mubr.msk.bf16.mxu0 %vm9095_vm1, %v9094_v30  ;;  %8303 = vmatpush3.bf16.msra.mxu0 %v8893_v37 }
 0x28d   :  { %8304 = vmatprep.subr.bf16.mxu0 %v9094_v30 }
 0x290   :  { %8305 = vmatpush3.bf16.msra.mxu0 %v8894_v38 }
 0x291   :  { %8306 = vmatprep.subr.bf16.mxu0 %v9094_v30 }
 0x294   :  { %8307 = vmatpush3.bf16.msra.mxu0 %v8895_v39 }
 0x295   :  { %8308 = vmatprep.subr.bf16.mxu0 %v9094_v30 }
 0x298   :  { %8309 = vmatpush3.bf16.msra.mxu0 %v8896_v40 }
 0x299   :  { %8310 = vmatprep.subr.bf16.mxu0 %v9094_v30 }
 0x29c   :  { %8311 = vmatpush3.bf16.msra.mxu0 %v8897_v41 }
 0x29d   :  { %8312 = vmatprep.subr.bf16.mxu0 %v9094_v30 }
 0x29e   :  { %v7987_v56 = vpop.f32.mrb[44].mxu0 }
 0x29f   :  { %v7988_v57 = vpop.f32.mrb[45].mxu0  ;;  %v8009_v60 = vpop.f32.mrb[44].mxu1 }
 0x2a0   :  { %v7989_v58 = vadd.f32 %v7988_v57, %v7987_v56  ;;  %v7990_v59 = vpop.f32.mrb[46].mxu0  ;;  %v8010_v62 = vpop.f32.mrb[45].mxu1  ;;  %8313 = vmatpush3.bf16.msra.mxu0 %v8898_v42 }
 0x2a1   :  { %v7991_v61 = vpop.f32.mrb[47].mxu0  ;;  %v8011_v0 = vadd.f32 %v8010_v62, %v8009_v60  ;;  %v8012_v1 = vpop.f32.mrb[46].mxu1  ;;  %8314 = vmatprep.subr.bf16.mxu0 %v9094_v30 }
 0x2a2   :  { %v6064_v63 = vadd.f32 %v7989_v58, %v6024_v52  ;;  %v8013_v2 = vpop.f32.mrb[47].mxu1 }
 0x2a4   :  { %v6104_v3 = vadd.f32 %v8011_v0, %v6064_v63 }
 0x2be   :  { %v8031_v4 = vpop.f32.mrb[48].mxu0 }
 0x2bf   :  { %v8032_v5 = vpop.f32.mrb[49].mxu0  ;;  %v8053_v8 = vpop.f32.mrb[48].mxu1 }
 0x2c0   :  { %v8033_v6 = vadd.f32 %v8032_v5, %v8031_v4  ;;  %v8034_v7 = vpop.f32.mrb[50].mxu0  ;;  %v8054_v11 = vpop.f32.mrb[49].mxu1 }
 0x2c1   :  { %v8035_v9 = vpop.f32.mrb[51].mxu0  ;;  %v8055_v12 = vadd.f32 %v8054_v11, %v8053_v8  ;;  %v8056_v13 = vpop.f32.mrb[50].mxu1 }
 0x2c2   :  { %v6144_v10 = vadd.f32 %v8033_v6, %v6104_v3  ;;  %v8057_v14 = vpop.f32.mrb[51].mxu1 }
 0x2c4   :  { %v6184_v15 = vadd.f32 %v8055_v12, %v6144_v10 }
 0x2de   :  { %v8075_v22 = vpop.f32.mrb[52].mxu0 }
 0x2df   :  { %v8076_v23 = vpop.f32.mrb[53].mxu0  ;;  %v8097_v27 = vpop.f32.mrb[52].mxu1 }
 0x2e0   :  { %v8077_v24 = vadd.f32 %v8076_v23, %v8075_v22  ;;  %v8078_v25 = vpop.f32.mrb[54].mxu0  ;;  %v8098_v31 = vpop.f32.mrb[53].mxu1  ;;  %v8899_v22 = vld [vmem:[#allocation9 + $0x30] sm:$0xff]   ;;  %v8900_v23 = vld [vmem:[#allocation9 + $0x38] sm:$0xff]  }
 0x2e1   :  { %v8079_v28 = vpop.f32.mrb[55].mxu0  ;;  %v8099_v32 = vadd.f32 %v8098_v31, %v8097_v27  ;;  %v8100_v33 = vpop.f32.mrb[54].mxu1  ;;  %8315 = vmatpush3.bf16.msra.mxu0 %v8899_v22 }
 0x2e2   :  { %v6224_v29 = vadd.f32 %v8077_v24, %v6184_v15  ;;  %v8101_v34 = vpop.f32.mrb[55].mxu1  ;;  %8316 = vmatprep.subr.bf16.mxu0 %v9094_v30 }
 0x2e4   :  { %v6264_v36 = vadd.f32 %v8099_v32, %v6224_v29 }
 0x2e5   :  { %8317 = vmatpush3.bf16.msra.mxu0 %v8900_v23 }
 0x2fe   :  { %v8119_v43 = vpop.f32.mrb[56].mxu0 }
 0x2ff   :  { %v8120_v44 = vpop.f32.mrb[57].mxu0  ;;  %v8141_v47 = vpop.f32.mrb[56].mxu1 }
 0x300   :  { %v8121_v45 = vadd.f32 %v8120_v44, %v8119_v43  ;;  %v8122_v46 = vpop.f32.mrb[58].mxu0  ;;  %v8142_v49 = vpop.f32.mrb[57].mxu1 }
 0x301   :  { %v8123_v48 = vpop.f32.mrb[59].mxu0  ;;  %v8143_v51 = vadd.f32 %v8142_v49, %v8141_v47  ;;  %v8144_v52 = vpop.f32.mrb[58].mxu1 }
 0x302   :  { %v6304_v50 = vadd.f32 %v8121_v45, %v6264_v36  ;;  %v8145_v53 = vpop.f32.mrb[59].mxu1 }
 0x304   :  { %v6344_v54 = vadd.f32 %v8143_v51, %v6304_v50 }
 0x31e   :  { %v8163_v55 = vpop.f32.mrb[60].mxu0 }
 0x31f   :  { %v8164_v56 = vpop.f32.mrb[61].mxu0  ;;  %v8185_v59 = vpop.f32.mrb[60].mxu1 }
 0x320   :  { %v8165_v57 = vadd.f32 %v8164_v56, %v8163_v55  ;;  %v8166_v58 = vpop.f32.mrb[62].mxu0  ;;  %v8186_v62 = vpop.f32.mrb[61].mxu1 }
 0x321   :  { %v8167_v60 = vpop.f32.mrb[63].mxu0  ;;  %v8187_v63 = vadd.f32 %v8186_v62, %v8185_v59  ;;  %v8188_v0 = vpop.f32.mrb[62].mxu1 }
 0x322   :  { %v6384_v61 = vadd.f32 %v8165_v57, %v6344_v54  ;;  %v8189_v1 = vpop.f32.mrb[63].mxu1 }
 0x324   :  { %v6424_v2 = vadd.f32 %v8187_v63, %v6384_v61 }
 0x33e   :  { %v8207_v3 = vpop.f32.mrb[64].mxu0 }
 0x33f   :  { %v8208_v4 = vpop.f32.mrb[65].mxu0  ;;  %v8229_v7 = vpop.f32.mrb[64].mxu1 }
 0x340   :  { %v8209_v5 = vadd.f32 %v8208_v4, %v8207_v3  ;;  %v8210_v6 = vpop.f32.mrb[66].mxu0  ;;  %v8230_v9 = vpop.f32.mrb[65].mxu1 }
 0x341   :  { %v8211_v8 = vpop.f32.mrb[67].mxu0  ;;  %v8231_v11 = vadd.f32 %v8230_v9, %v8229_v7  ;;  %v8232_v12 = vpop.f32.mrb[66].mxu1 }
 0x342   :  { %v6464_v10 = vadd.f32 %v8209_v5, %v6424_v2  ;;  %v8233_v13 = vpop.f32.mrb[67].mxu1 }
 0x344   :  { %v6504_v14 = vadd.f32 %v8231_v11, %v6464_v10 }
 0x35e   :  { %v6543_v15 = vpop.f32.mrb[68].mxu0 }
 0x35f   :  { %v6544_v16 = vadd.f32 %v6543_v15, %v6504_v14  ;;  %v8280_v17 = vpop.f32.mrb[69].mxu0 }
 0x360   :  { %v6546_v18 = vpop.f32.mrb[70].mxu0 }
 0x361   :  { %v6549_v19 = vmax.f32 %v6544_v16, 0.0  ;;  %v8281_v20 = vpop.f32.mrb[71].mxu0 }
 0x363   :  { %v6550_v21 = vpack.c.bf16 %v6549_v19, %v6549_v19 }
 0x365   :  { %8299 = vmatmul.mubr.bf16.vlgmr.msra.gmra.mrb[68].mxu1 %v6550_v21 }
 0x438   :  { %v6649_v24 = vpop.f32.mrb[68].mxu1 }
 0x439   :  { %v6655_v25 = vmax.f32 %v6649_v24, 0.0  ;;  %v8300_v26 = vpop.f32.mrb[69].mxu1 }
 0x43a   :  { %v6652_v27 = vpop.f32.mrb[70].mxu1 }
 0x43b   :  { %v6656_v28 = vadd.f32 %v6655_v25, %v6549_v19  ;;  %v8301_v29 = vpop.f32.mrb[71].mxu1 }
 0x43d   :  { %v6657_v31 = vpack.c.bf16 %v6656_v28, %v6656_v28 }
 0x43f   :  { %8319 = vmatmul.mubr.bf16.vlgmr.msra.gmra.mrb[72].mxu0 %v6657_v31 }
 0x512   :  { %v6756_v32 = vpop.f32.mrb[72].mxu0 }
 0x513   :  { %6762 = vst [vmem:[#allocation11] sm:$0xff] %v6756_v32  ;;  %v8320_v33 = vpop.f32.mrb[73].mxu0 }
 0x514   :  { %v6759_v34 = vpop.f32.mrb[74].mxu0 }
 0x515   :  { %9068 = shalt.err (!%p9065_p8)
}
 0x516   :  { %s9069_s1 = scalar_lea.hbm %s9255_s4, 128 }
 0x517   :  { %p9070_p9 = scmp.ne.s32.totalorder %s9255_s4, %s9069_s1  ;;  %p9073_p10 = scmp.lt.u32.totalorder %s9069_s1, %s9255_s4 }
 0x519   :  { %p9075_p11 = pnand %p9073_p10, %p9070_p9 }
 0x51b   :  { %9078 = shalt.err (!%p9075_p11)
}
 0x51c   :  { %6772 = dma.vmem_to_hbm [thread:$0]  %s6770_s25, 128, %s9255_s4, [#allocation5]   ;;  %v8321_v30 = vpop.f32.mrb[75].mxu0 }
 0x51d   :  { %9085 = dma.done.wait [#allocation5], 128  }
 0x51e   :  { %9086 = vsyncadd [#allocation5], 4294967168 }
 0x51f   :  { %6776 = vsyncpa [#allocation4], 1 }
 0x520   :  { %6777 = vsyncpa [#allocation7], 1 }
 0x521   :  { %6778 = vsyncpa [#allocation10], 1 }
 0x522   :  { %6779 = vsyncpa [#allocation5], 1 }

</bundles_post_ra>
